<compile_context>
chip_gen: v5e
topology: v5e:2x2
jax: 0.10.0
libtpu: 0.0.40
codegen_flags: <defaults>
</compile_context>

<pallas_src>
import functools

import jax
import jax.numpy as jnp
from jax.experimental import pallas as pl
from jax.experimental.pallas import tpu as pltpu

_VMEM_LIMIT = 48 * 1024 * 1024  # explicit scoped-VMEM budget (fits v5e/v6e/v7x)


def _choose_tile(n, candidates):
    """Largest candidate tile dividing n; falls back to the full extent."""
    for t in candidates:
        if n % t == 0:
            return t
    return n


# --------------------------------------------------------------------------
# Kernel 1: generic Linear + ReLU projection  (y = relu(x @ W + b))
# grid = (batch, seq-tile, out-col-tile); all axes independent ("parallel").
# --------------------------------------------------------------------------
def _linear_relu_kernel(x_ref, w_ref, b_ref, o_ref):
    # x_ref : (1, tt, C)   input tile (f32)
    # w_ref : (C, tn)      weight block, (in, out) layout, bf16
    # b_ref : (1, tn)      bias block, f32
    # o_ref : (1, tt, tn)
    x = x_ref[0].astype(jnp.bfloat16)                    # bf16 MXU operand
    y = jnp.dot(x, w_ref[...], preferred_element_type=jnp.float32) + b_ref[...]
    o_ref[0] = jnp.maximum(y, 0.0).astype(o_ref.dtype)   # fused Linear + ReLU


def _linear_relu(x, w_t, b, out_dtype):
    B, T, C = x.shape
    Cout = w_t.shape[1]
    tt = _choose_tile(T, (256, 128))
    tn = _choose_tile(Cout, (512, 256, 128))
    grid = (B, T // tt, Cout // tn)
    return pl.pallas_call(
        _linear_relu_kernel,
        out_shape=jax.ShapeDtypeStruct((B, T, Cout), out_dtype),
        grid=grid,
        in_specs=[
            pl.BlockSpec((1, tt, C), lambda bi, ti, ni: (bi, ti, 0)),
            pl.BlockSpec((C, tn), lambda bi, ti, ni: (0, ni)),
            pl.BlockSpec((1, tn), lambda bi, ti, ni: (0, ni)),
        ],
        out_specs=pl.BlockSpec((1, tt, tn), lambda bi, ti, ni: (bi, ti, ni)),
        compiler_params=pltpu.CompilerParams(
            dimension_semantics=("parallel", "parallel", "parallel"),
            vmem_limit_bytes=_VMEM_LIMIT),
    )(x, w_t, b)


# --------------------------------------------------------------------------
# Kernel 2: per-head attention with online softmax over a tiled kv axis,
# then head merge, residual (+projected Q) and LayerNorm in the last kv step.
# grid = (batch, q-tile, kv-tile); kv axis last, "arbitrary".
# --------------------------------------------------------------------------
def _flash_mha_kernel(qp_ref, kp_ref, vp_ref, g_ref, bb_ref, o_ref,
                      m_sc, l_sc, acc_sc, *, num_heads):
    # qp_ref : (1, tq, C)  projected+ReLU'd Q tile (f32; also the residual)
    # kp_ref : (1, tk, C)  projected K tile (bf16, pre-scaled by 1/sqrt(dh))
    # vp_ref : (1, tk, C)  projected V tile (bf16)
    # g_ref  : (1, C)      LayerNorm gamma        bb_ref: (1, C) LayerNorm beta
    # o_ref  : (1, tq, C)
    # m_sc   : (tq, H) f32 running row-max per head
    # l_sc   : (tq, H) f32 running softmax denominator per head
    # acc_sc : (tq, C) f32 running context, head h in columns [h*dh, (h+1)*dh)
    C = qp_ref.shape[-1]
    dh = C // num_heads
    kv_step = pl.program_id(2)

    @pl.when(kv_step == 0)
    def _init():
        m_sc[...] = jnp.full_like(m_sc, -jnp.inf)
        l_sc[...] = jnp.zeros_like(l_sc)
        acc_sc[...] = jnp.zeros_like(acc_sc)

    q_bf = qp_ref[0].astype(jnp.bfloat16)   # (tq, C) — K already carries 1/sqrt(dh)
    k_tile = kp_ref[0]                      # (tk, C) bf16
    v_tile = vp_ref[0]                      # (tk, C) bf16

    # Static head loop: offsets are compile-time constants (dynamic lane-dim
    # slicing is avoided on purpose).  Each head's partials go straight into
    # scratch column slices — no concatenate, live ranges stay one head wide.
    for h in range(num_heads):
        lo = h * dh
        qh = q_bf[:, lo:lo + dh]            # (tq, dh)
        kh = k_tile[:, lo:lo + dh]          # (tk, dh)
        vh = v_tile[:, lo:lo + dh]          # (tk, dh)
        # q @ k^T, contracting last axes (no materialised transpose).
        s = jax.lax.dot_general(qh, kh, (((1,), (1,)), ((), ())),
                                preferred_element_type=jnp.float32)   # (tq, tk)
        m_old = m_sc[:, h:h + 1]                                      # (tq, 1)
        m_new = jnp.maximum(m_old, jnp.max(s, axis=-1, keepdims=True))
        alpha = jnp.exp(m_old - m_new)
        p = jnp.exp(s - m_new)
        l_sc[:, h:h + 1] = alpha * l_sc[:, h:h + 1] + jnp.sum(p, axis=-1,
                                                              keepdims=True)
        pv = jax.lax.dot_general(p.astype(jnp.bfloat16), vh,
                                 (((1,), (0,)), ((), ())),
                                 preferred_element_type=jnp.float32)  # (tq, dh)
        acc_sc[:, lo:lo + dh] = alpha * acc_sc[:, lo:lo + dh] + pv
        m_sc[:, h:h + 1] = m_new

    @pl.when(kv_step == pl.num_programs(2) - 1)
    def _finalize():
        # Normalize each head's context by its softmax denominator.
        for h in range(num_heads):
            lo = h * dh
            inv = pl.reciprocal(l_sc[:, h:h + 1], approx=True)   # EUP slot
            acc_sc[:, lo:lo + dh] = acc_sc[:, lo:lo + dh] * inv
        # Residual with the *projected* Q, then LayerNorm (PyTorch defaults).
        x = acc_sc[...] + qp_ref[0]
        mean = jnp.mean(x, axis=-1, keepdims=True)
        var = jnp.mean((x - mean) ** 2, axis=-1, keepdims=True)
        y = (x - mean) * jax.lax.rsqrt(var + 1e-5)
        o_ref[0] = (y * g_ref[...] + bb_ref[...]).astype(o_ref.dtype)


def _flash_attention(qp, kp, vp, ln_g, ln_b, num_heads, out_dtype):
    B, Tq, C = qp.shape
    Tk = kp.shape[1]
    tq = _choose_tile(Tq, (256, 128))
    tk = _choose_tile(Tk, (512, 256, 128))
    grid = (B, Tq // tq, Tk // tk)
    kernel = functools.partial(_flash_mha_kernel, num_heads=num_heads)
    return pl.pallas_call(
        kernel,
        out_shape=jax.ShapeDtypeStruct((B, Tq, C), out_dtype),
        grid=grid,
        in_specs=[
            pl.BlockSpec((1, tq, C), lambda bi, qi, ki: (bi, qi, 0)),   # Qp tile
            pl.BlockSpec((1, tk, C), lambda bi, qi, ki: (bi, ki, 0)),   # Kp tile
            pl.BlockSpec((1, tk, C), lambda bi, qi, ki: (bi, ki, 0)),   # Vp tile
            pl.BlockSpec((1, C), lambda bi, qi, ki: (0, 0)),            # ln gamma
            pl.BlockSpec((1, C), lambda bi, qi, ki: (0, 0)),            # ln beta
        ],
        out_specs=pl.BlockSpec((1, tq, C), lambda bi, qi, ki: (bi, qi, 0)),
        scratch_shapes=[
            pltpu.VMEM((tq, num_heads), jnp.float32),   # m
            pltpu.VMEM((tq, num_heads), jnp.float32),   # l
            pltpu.VMEM((tq, C), jnp.float32),           # acc (head-merged)
        ],
        compiler_params=pltpu.CompilerParams(
            dimension_semantics=("parallel", "parallel", "arbitrary"),
            vmem_limit_bytes=_VMEM_LIMIT),
    )(qp, kp, vp, ln_g, ln_b)


# --------------------------------------------------------------------------
# One-time parameter preparation (outside the per-call jitted forward):
# transpose PyTorch (out, in) weights to (in, out), cast to bf16, and fold the
# 1/sqrt(dh) attention scale into the K projection (ReLU(s*x) == s*ReLU(x)).
# --------------------------------------------------------------------------
def prepare_params(params, num_heads):
    C = params["wq"].shape[0]
    assert C % num_heads == 0, "hidden_size must be divisible by num_heads"
    scale = 1.0 / ((C // num_heads) ** 0.5)
    f32 = jnp.float32
    return {
        "wq_t": params["wq"].T.astype(jnp.bfloat16),
        "bq": params["bq"].reshape(1, C).astype(f32),
        "wk_t": (params["wk"].T * scale).astype(jnp.bfloat16),
        "bk": (params["bk"] * scale).reshape(1, C).astype(f32),
        "wv_t": params["wv"].T.astype(jnp.bfloat16),
        "bv": params["bv"].reshape(1, C).astype(f32),
        "ln_g": params["ln_g"].reshape(1, C).astype(f32),
        "ln_b": params["ln_b"].reshape(1, C).astype(f32),
    }


@functools.partial(jax.jit, static_argnames=("num_heads",))
def multi_head_attention(Q, K, V, prepared, key_pad_masks=None,
                         query_pad_masks=None, num_heads=8):
    # The reference's masked_fill calls are not in-place and their results are
    # discarded, so the masks are intentionally ignored (API parity only).
    del key_pad_masks, query_pad_masks
    # Projections (computed exactly once each — not per q-tile):
    qp = _linear_relu(Q, prepared["wq_t"], prepared["bq"], jnp.float32)   # residual
    kp = _linear_relu(K, prepared["wk_t"], prepared["bk"], jnp.bfloat16)  # pre-scaled
    vp = _linear_relu(V, prepared["wv_t"], prepared["bv"], jnp.bfloat16)
    return _flash_attention(qp, kp, vp, prepared["ln_g"], prepared["ln_b"],
                            num_heads, Q.dtype)


# --------------------------------------------------------------------------
# Params (PyTorch-style init) and pure-JAX f32 reference for verification.
# --------------------------------------------------------------------------
def init_params(key, hidden_size):
    ks = jax.random.split(key, 6)
    scale = 1.0 / jnp.sqrt(hidden_size)
    u = lambda k, shape: jax.random.uniform(k, shape, jnp.float32, -scale, scale)
    return {
        "wq": u(ks[0], (hidden_size, hidden_size)),   # PyTorch (out, in) layout
        "bq": u(ks[1], (hidden_size,)),
        "wk": u(ks[2], (hidden_size, hidden_size)),
        "bk": u(ks[3], (hidden_size,)),
        "wv": u(ks[4], (hidden_size, hidden_size)),
        "bv": u(ks[5], (hidden_size,)),
        "ln_g": jnp.ones((hidden_size,), jnp.float32),
        "ln_b": jnp.zeros((hidden_size,), jnp.float32),
    }


def _reference(Q, K, V, params, num_heads):
    proj = lambda x, w, b: jnp.maximum(x @ w.T + b, 0.0)
    Qp = proj(Q, params["wq"], params["bq"])
    Kp = proj(K, params["wk"], params["bk"])
    Vp = proj(V, params["wv"], params["bv"])
    B, Tq, C = Qp.shape
    Tk = Kp.shape[1]
    dh = C // num_heads
    qh = Qp.reshape(B, Tq, num_heads, dh).transpose(0, 2, 1, 3)
    kh = Kp.reshape(B, Tk, num_heads, dh).transpose(0, 2, 1, 3)
    vh = Vp.reshape(B, Tk, num_heads, dh).transpose(0, 2, 1, 3)
    s = jnp.einsum("bhqd,bhkd->bhqk", qh, kh) / jnp.sqrt(jnp.float32(dh))
    p = jax.nn.softmax(s, axis=-1)
    o = jnp.einsum("bhqk,bhkd->bhqd", p, vh)
    attn = o.transpose(0, 2, 1, 3).reshape(B, Tq, C)
    x = attn + Qp
    mean = x.mean(-1, keepdims=True)
    var = ((x - mean) ** 2).mean(-1, keepdims=True)
    return (x - mean) / jnp.sqrt(var + 1e-5) * params["ln_g"] + params["ln_b"]


if __name__ == "__main__":
    B, Tq, Tk, C, H = 2, 8, 8, 32, 8
    root = jax.random.PRNGKey(0)
    kq, kk, kv, kp = jax.random.split(root, 4)

    Q = jax.random.normal(kq, (B, Tq, C), jnp.float32)
    K = jax.random.normal(kk, (B, Tk, C), jnp.float32)
    V = jax.random.normal(kv, (B, Tk, C), jnp.float32)
    key_pad_masks = jnp.zeros((B, Tq, Tk), jnp.bool_)    # ignored (see header)
    query_pad_masks = jnp.zeros((B, Tq, Tk), jnp.bool_)  # ignored (see header)
    params = init_params(kp, C)
    prepared = prepare_params(params, num_heads=H)       # one-time prep

    out = multi_head_attention(Q, K, V, prepared, key_pad_masks,
                               query_pad_masks, num_heads=H)
    jax.block_until_ready(out)
    assert out.shape == (B, Tq, C)

    ref = _reference(Q, K, V, params, num_heads=H)       # f32 reference
    max_err = float(jnp.max(jnp.abs(out - ref)))
    # bf16 MXU operands (f32 accumulation) → ~1e-2-level deviation vs f32 ref.
    assert max_err < 5e-2, max_err
    print("KERNEL_OK")
</pallas_src>

<mosaic_0001>
module attributes {stable_mosaic.version = 11 : i64} {
  func.func @_linear_relu_kernel(%arg0: i32, %arg1: i32, %arg2: i32, %arg3: memref<1x8x32xf32, #tpu.memory_space<vmem>>, %arg4: memref<32x32xbf16, #tpu.memory_space<vmem>>, %arg5: memref<1x32xf32, #tpu.memory_space<vmem>>, %arg6: memref<1x8x32xbf16, #tpu.memory_space<vmem>>) attributes {dimension_semantics = [#tpu.dimension_semantics<parallel>, #tpu.dimension_semantics<parallel>, #tpu.dimension_semantics<parallel>], iteration_bounds = array<i64: 2, 1, 1>, scalar_prefetch = 0 : i64, scratch_operands = 0 : i64, tpu.core_type = #tpu.core_type<tc>, window_params = [{transform_indices = @transform_0, window_bounds = array<i64: 1, 8, 32>}, {transform_indices = @transform_1, window_bounds = array<i64: 32, 32>}, {transform_indices = @transform_2, window_bounds = array<i64: 1, 32>}, {transform_indices = @transform_3, window_bounds = array<i64: 1, 8, 32>}]} {
    %c0 = arith.constant 0 : index
    %c0_0 = arith.constant 0 : index
    %c0_1 = arith.constant 0 : index
    %0 = vector.load %arg3[%c0, %c0_0, %c0_1] : memref<1x8x32xf32, #tpu.memory_space<vmem>>, vector<1x8x32xf32>
    %1 = vector.shape_cast %0 : vector<1x8x32xf32> to vector<8x32xf32>
    %2 = arith.truncf %1 : vector<8x32xf32> to vector<8x32xbf16>
    %c0_2 = arith.constant 0 : index
    %c0_3 = arith.constant 0 : index
    %3 = vector.load %arg4[%c0_2, %c0_3] : memref<32x32xbf16, #tpu.memory_space<vmem>>, vector<32x32xbf16>
    %cst = arith.constant dense<0.000000e+00> : vector<8x32xf32>
    %4 = tpu.matmul %2, %3, %cst {dimension_numbers = #tpu.dot_dimension_numbers<[1], [0], [0], [1], [0, 0, 1, 1], [], []>} : vector<8x32xbf16>, vector<32x32xbf16>, vector<8x32xf32> -> vector<8x32xf32>
    %c0_4 = arith.constant 0 : index
    %c0_5 = arith.constant 0 : index
    %5 = vector.load %arg5[%c0_4, %c0_5] : memref<1x32xf32, #tpu.memory_space<vmem>>, vector<1x32xf32>
    %6 = vector.broadcast %5 : vector<1x32xf32> to vector<8x32xf32>
    %7 = arith.addf %4, %6 : vector<8x32xf32>
    %cst_6 = arith.constant 0.000000e+00 : f32
    %8 = vector.broadcast %cst_6 : f32 to vector<8x32xf32>
    %9 = arith.maximumf %7, %8 : vector<8x32xf32>
    %10 = arith.truncf %9 : vector<8x32xf32> to vector<8x32xbf16>
    %c0_7 = arith.constant 0 : index
    %c0_8 = arith.constant 0 : index
    %c0_9 = arith.constant 0 : index
    %11 = vector.load %arg6[%c0_7, %c0_8, %c0_9] : memref<1x8x32xbf16, #tpu.memory_space<vmem>>, vector<1x8x32xbf16>
    %12 = vector.shape_cast %11 : vector<1x8x32xbf16> to vector<8x32xbf16>
    %13 = vector.shape_cast %10 : vector<8x32xbf16> to vector<1x8x32xbf16>
    tpu.vector_store %arg6[%c0_7, %c0_8, %c0_9], %13 {strides = array<i32>} : memref<1x8x32xbf16, #tpu.memory_space<vmem>>, vector<1x8x32xbf16>,
    return
  }
  func.func @transform_0(%arg0: i32, %arg1: i32, %arg2: i32) -> (i32, i32, i32) {
    %c0_i32 = arith.constant 0 : i32
    %c0_i32_0 = arith.constant 0 : i32
    return %arg0, %arg1, %c0_i32 : i32, i32, i32
  }
  func.func @transform_1(%arg0: i32, %arg1: i32, %arg2: i32) -> (i32, i32) {
    %c0_i32 = arith.constant 0 : i32
    %c0_i32_0 = arith.constant 0 : i32
    return %c0_i32, %arg2 : i32, i32
  }
  func.func @transform_2(%arg0: i32, %arg1: i32, %arg2: i32) -> (i32, i32) {
    %c0_i32 = arith.constant 0 : i32
    %c0_i32_0 = arith.constant 0 : i32
    return %c0_i32, %arg2 : i32, i32
  }
  func.func @transform_3(%arg0: i32, %arg1: i32, %arg2: i32) -> (i32, i32, i32) {
    %c0_i32 = arith.constant 0 : i32
    return %arg0, %arg1, %arg2 : i32, i32, i32
  }
}

module attributes {stable_mosaic.version = 11 : i64} {
  func.func @_flash_mha_kernel(%arg0: i32, %arg1: i32, %arg2: i32, %arg3: memref<1x8x32xf32, #tpu.memory_space<vmem>>, %arg4: memref<1x8x32xbf16, #tpu.memory_space<vmem>>, %arg5: memref<1x8x32xbf16, #tpu.memory_space<vmem>>, %arg6: memref<1x32xf32, #tpu.memory_space<vmem>>, %arg7: memref<1x32xf32, #tpu.memory_space<vmem>>, %arg8: memref<1x8x32xf32, #tpu.memory_space<vmem>>, %arg9: memref<8x8xf32, #tpu.memory_space<vmem>>, %arg10: memref<8x8xf32, #tpu.memory_space<vmem>>, %arg11: memref<8x32xf32, #tpu.memory_space<vmem>>) attributes {dimension_semantics = [#tpu.dimension_semantics<parallel>, #tpu.dimension_semantics<parallel>, #tpu.dimension_semantics<arbitrary>], iteration_bounds = array<i64: 2, 1, 1>, scalar_prefetch = 0 : i64, scratch_operands = 3 : i64, tpu.core_type = #tpu.core_type<tc>, window_params = [{transform_indices = @transform_0, window_bounds = array<i64: 1, 8, 32>}, {transform_indices = @transform_1, window_bounds = array<i64: 1, 8, 32>}, {transform_indices = @transform_2, window_bounds = array<i64: 1, 8, 32>}, {pipeline_mode = #tpu.pipeline_mode<synchronous>, transform_indices = @transform_3, window_bounds = array<i64: 1, 32>}, {pipeline_mode = #tpu.pipeline_mode<synchronous>, transform_indices = @transform_4, window_bounds = array<i64: 1, 32>}, {transform_indices = @transform_5, window_bounds = array<i64: 1, 8, 32>}]} {
    %c0_i32 = arith.constant 0 : i32
    %0 = arith.cmpi eq, %arg2, %c0_i32 : i32
    %1 = arith.extui %0 : i1 to i32
    %c0_i32_0 = arith.constant 0 : i32
    %2 = arith.cmpi ne, %1, %c0_i32_0 : i32
    scf.if %2 {
      %cst_125 = arith.constant 0xFF800000 : f32
      %229 = vector.broadcast %cst_125 : f32 to vector<8x8xf32>
      %c0_126 = arith.constant 0 : index
      %c0_127 = arith.constant 0 : index
      %230 = vector.load %arg9[%c0_126, %c0_127] : memref<8x8xf32, #tpu.memory_space<vmem>>, vector<8x8xf32>
      tpu.vector_store %arg9[%c0_126, %c0_127], %229 {strides = array<i32>} : memref<8x8xf32, #tpu.memory_space<vmem>>, vector<8x8xf32>,
      %cst_128 = arith.constant 0.000000e+00 : f32
      %231 = vector.broadcast %cst_128 : f32 to vector<8x8xf32>
      %c0_129 = arith.constant 0 : index
      %c0_130 = arith.constant 0 : index
      %232 = vector.load %arg10[%c0_129, %c0_130] : memref<8x8xf32, #tpu.memory_space<vmem>>, vector<8x8xf32>
      tpu.vector_store %arg10[%c0_129, %c0_130], %231 {strides = array<i32>} : memref<8x8xf32, #tpu.memory_space<vmem>>, vector<8x8xf32>,
      %cst_131 = arith.constant 0.000000e+00 : f32
      %233 = vector.broadcast %cst_131 : f32 to vector<8x32xf32>
      %c0_132 = arith.constant 0 : index
      %c0_133 = arith.constant 0 : index
      %234 = vector.load %arg11[%c0_132, %c0_133] : memref<8x32xf32, #tpu.memory_space<vmem>>, vector<8x32xf32>
      tpu.vector_store %arg11[%c0_132, %c0_133], %233 {strides = array<i32>} : memref<8x32xf32, #tpu.memory_space<vmem>>, vector<8x32xf32>,
    } else {
    }
    %c0 = arith.constant 0 : index
    %c0_1 = arith.constant 0 : index
    %c0_2 = arith.constant 0 : index
    %3 = vector.load %arg3[%c0, %c0_1, %c0_2] : memref<1x8x32xf32, #tpu.memory_space<vmem>>, vector<1x8x32xf32>
    %4 = vector.shape_cast %3 : vector<1x8x32xf32> to vector<8x32xf32>
    %5 = arith.truncf %4 : vector<8x32xf32> to vector<8x32xbf16>
    %c0_3 = arith.constant 0 : index
    %c0_4 = arith.constant 0 : index
    %c0_5 = arith.constant 0 : index
    %6 = vector.load %arg4[%c0_3, %c0_4, %c0_5] : memref<1x8x32xbf16, #tpu.memory_space<vmem>>, vector<1x8x32xbf16>
    %7 = vector.shape_cast %6 : vector<1x8x32xbf16> to vector<8x32xbf16>
    %c0_6 = arith.constant 0 : index
    %c0_7 = arith.constant 0 : index
    %c0_8 = arith.constant 0 : index
    %8 = vector.load %arg5[%c0_6, %c0_7, %c0_8] : memref<1x8x32xbf16, #tpu.memory_space<vmem>>, vector<1x8x32xbf16>
    %9 = vector.shape_cast %8 : vector<1x8x32xbf16> to vector<8x32xbf16>
    %10 = vector.extract_strided_slice %5 {offsets = [0, 0], sizes = [8, 4], strides = [1, 1]} : vector<8x32xbf16> to vector<8x4xbf16>
    %11 = vector.extract_strided_slice %7 {offsets = [0, 0], sizes = [8, 4], strides = [1, 1]} : vector<8x32xbf16> to vector<8x4xbf16>
    %12 = vector.extract_strided_slice %9 {offsets = [0, 0], sizes = [8, 4], strides = [1, 1]} : vector<8x32xbf16> to vector<8x4xbf16>
    %cst = arith.constant dense<0.000000e+00> : vector<8x8xf32>
    %13 = tpu.matmul %10, %11, %cst {dimension_numbers = #tpu.dot_dimension_numbers<[1], [1], [0], [0], [0, 0, 1, 0], [], []>} : vector<8x4xbf16>, vector<8x4xbf16>, vector<8x8xf32> -> vector<8x8xf32>
    %c0_9 = arith.constant 0 : index
    %c0_10 = arith.constant 0 : index
    %14 = vector.load %arg9[%c0_9, %c0_10] : memref<8x8xf32, #tpu.memory_space<vmem>>, vector<8x1xf32>
    %cst_11 = arith.constant dense<0xFF800000> : vector<8xf32>
    %15 = vector.multi_reduction <maximumf>, %13, %cst_11 [1] : vector<8x8xf32> to vector<8xf32>
    %16 = vector.shape_cast %15 : vector<8xf32> to vector<8x1xf32>
    %17 = arith.maximumf %14, %16 : vector<8x1xf32>
    %18 = arith.subf %14, %17 : vector<8x1xf32>
    %19 = math.exp %18 : vector<8x1xf32>
    %20 = vector.broadcast %17 : vector<8x1xf32> to vector<8x8xf32>
    %21 = arith.subf %13, %20 : vector<8x8xf32>
    %22 = math.exp %21 : vector<8x8xf32>
    %c0_12 = arith.constant 0 : index
    %c0_13 = arith.constant 0 : index
    %23 = vector.load %arg10[%c0_12, %c0_13] : memref<8x8xf32, #tpu.memory_space<vmem>>, vector<8x1xf32>
    %24 = arith.mulf %19, %23 : vector<8x1xf32>
    %cst_14 = arith.constant dense<0.000000e+00> : vector<8xf32>
    %25 = vector.multi_reduction <add>, %22, %cst_14 [1] : vector<8x8xf32> to vector<8xf32>
    %26 = vector.shape_cast %25 : vector<8xf32> to vector<8x1xf32>
    %27 = arith.addf %24, %26 : vector<8x1xf32>
    %c0_15 = arith.constant 0 : index
    %c0_16 = arith.constant 0 : index
    %28 = vector.load %arg10[%c0_15, %c0_16] : memref<8x8xf32, #tpu.memory_space<vmem>>, vector<8x1xf32>
    tpu.vector_store %arg10[%c0_15, %c0_16], %27 {strides = array<i32>} : memref<8x8xf32, #tpu.memory_space<vmem>>, vector<8x1xf32>,
    %29 = arith.truncf %22 : vector<8x8xf32> to vector<8x8xbf16>
    %cst_17 = arith.constant dense<0.000000e+00> : vector<8x4xf32>
    %30 = tpu.matmul %29, %12, %cst_17 {dimension_numbers = #tpu.dot_dimension_numbers<[1], [0], [0], [1], [0, 0, 1, 1], [], []>} : vector<8x8xbf16>, vector<8x4xbf16>, vector<8x4xf32> -> vector<8x4xf32>
    %c0_18 = arith.constant 0 : index
    %c0_19 = arith.constant 0 : index
    %31 = vector.load %arg11[%c0_18, %c0_19] : memref<8x32xf32, #tpu.memory_space<vmem>>, vector<8x4xf32>
    %32 = vector.broadcast %19 : vector<8x1xf32> to vector<8x4xf32>
    %33 = arith.mulf %32, %31 : vector<8x4xf32>
    %34 = arith.addf %33, %30 : vector<8x4xf32>
    %c0_20 = arith.constant 0 : index
    %c0_21 = arith.constant 0 : index
    %35 = vector.load %arg11[%c0_20, %c0_21] : memref<8x32xf32, #tpu.memory_space<vmem>>, vector<8x4xf32>
    tpu.vector_store %arg11[%c0_20, %c0_21], %34 {strides = array<i32>} : memref<8x32xf32, #tpu.memory_space<vmem>>, vector<8x4xf32>,
    %c0_22 = arith.constant 0 : index
    %c0_23 = arith.constant 0 : index
    %36 = vector.load %arg9[%c0_22, %c0_23] : memref<8x8xf32, #tpu.memory_space<vmem>>, vector<8x1xf32>
    tpu.vector_store %arg9[%c0_22, %c0_23], %17 {strides = array<i32>} : memref<8x8xf32, #tpu.memory_space<vmem>>, vector<8x1xf32>,
    %37 = vector.extract_strided_slice %5 {offsets = [0, 4], sizes = [8, 4], strides = [1, 1]} : vector<8x32xbf16> to vector<8x4xbf16>
    %38 = vector.extract_strided_slice %7 {offsets = [0, 4], sizes = [8, 4], strides = [1, 1]} : vector<8x32xbf16> to vector<8x4xbf16>
    %39 = vector.extract_strided_slice %9 {offsets = [0, 4], sizes = [8, 4], strides = [1, 1]} : vector<8x32xbf16> to vector<8x4xbf16>
    %cst_24 = arith.constant dense<0.000000e+00> : vector<8x8xf32>
    %40 = tpu.matmul %37, %38, %cst_24 {dimension_numbers = #tpu.dot_dimension_numbers<[1], [1], [0], [0], [0, 0, 1, 0], [], []>} : vector<8x4xbf16>, vector<8x4xbf16>, vector<8x8xf32> -> vector<8x8xf32>
    %c0_25 = arith.constant 0 : index
    %c1 = arith.constant 1 : index
    %41 = vector.load %arg9[%c0_25, %c1] : memref<8x8xf32, #tpu.memory_space<vmem>>, vector<8x1xf32>
    %cst_26 = arith.constant dense<0xFF800000> : vector<8xf32>
    %42 = vector.multi_reduction <maximumf>, %40, %cst_26 [1] : vector<8x8xf32> to vector<8xf32>
    %43 = vector.shape_cast %42 : vector<8xf32> to vector<8x1xf32>
    %44 = arith.maximumf %41, %43 : vector<8x1xf32>
    %45 = arith.subf %41, %44 : vector<8x1xf32>
    %46 = math.exp %45 : vector<8x1xf32>
    %47 = vector.broadcast %44 : vector<8x1xf32> to vector<8x8xf32>
    %48 = arith.subf %40, %47 : vector<8x8xf32>
    %49 = math.exp %48 : vector<8x8xf32>
    %c0_27 = arith.constant 0 : index
    %c1_28 = arith.constant 1 : index
    %50 = vector.load %arg10[%c0_27, %c1_28] : memref<8x8xf32, #tpu.memory_space<vmem>>, vector<8x1xf32>
    %51 = arith.mulf %46, %50 : vector<8x1xf32>
    %cst_29 = arith.constant dense<0.000000e+00> : vector<8xf32>
    %52 = vector.multi_reduction <add>, %49, %cst_29 [1] : vector<8x8xf32> to vector<8xf32>
    %53 = vector.shape_cast %52 : vector<8xf32> to vector<8x1xf32>
    %54 = arith.addf %51, %53 : vector<8x1xf32>
    %c0_30 = arith.constant 0 : index
    %c1_31 = arith.constant 1 : index
    %55 = vector.load %arg10[%c0_30, %c1_31] : memref<8x8xf32, #tpu.memory_space<vmem>>, vector<8x1xf32>
    tpu.vector_store %arg10[%c0_30, %c1_31], %54 {strides = array<i32>} : memref<8x8xf32, #tpu.memory_space<vmem>>, vector<8x1xf32>,
    %56 = arith.truncf %49 : vector<8x8xf32> to vector<8x8xbf16>
    %cst_32 = arith.constant dense<0.000000e+00> : vector<8x4xf32>
    %57 = tpu.matmul %56, %39, %cst_32 {dimension_numbers = #tpu.dot_dimension_numbers<[1], [0], [0], [1], [0, 0, 1, 1], [], []>} : vector<8x8xbf16>, vector<8x4xbf16>, vector<8x4xf32> -> vector<8x4xf32>
    %c0_33 = arith.constant 0 : index
    %c4 = arith.constant 4 : index
    %58 = vector.load %arg11[%c0_33, %c4] : memref<8x32xf32, #tpu.memory_space<vmem>>, vector<8x4xf32>
    %59 = vector.broadcast %46 : vector<8x1xf32> to vector<8x4xf32>
    %60 = arith.mulf %59, %58 : vector<8x4xf32>
    %61 = arith.addf %60, %57 : vector<8x4xf32>
    %c0_34 = arith.constant 0 : index
    %c4_35 = arith.constant 4 : index
    %62 = vector.load %arg11[%c0_34, %c4_35] : memref<8x32xf32, #tpu.memory_space<vmem>>, vector<8x4xf32>
    tpu.vector_store %arg11[%c0_34, %c4_35], %61 {strides = array<i32>} : memref<8x32xf32, #tpu.memory_space<vmem>>, vector<8x4xf32>,
    %c0_36 = arith.constant 0 : index
    %c1_37 = arith.constant 1 : index
    %63 = vector.load %arg9[%c0_36, %c1_37] : memref<8x8xf32, #tpu.memory_space<vmem>>, vector<8x1xf32>
    tpu.vector_store %arg9[%c0_36, %c1_37], %44 {strides = array<i32>} : memref<8x8xf32, #tpu.memory_space<vmem>>, vector<8x1xf32>,
    %64 = vector.extract_strided_slice %5 {offsets = [0, 8], sizes = [8, 4], strides = [1, 1]} : vector<8x32xbf16> to vector<8x4xbf16>
    %65 = vector.extract_strided_slice %7 {offsets = [0, 8], sizes = [8, 4], strides = [1, 1]} : vector<8x32xbf16> to vector<8x4xbf16>
    %66 = vector.extract_strided_slice %9 {offsets = [0, 8], sizes = [8, 4], strides = [1, 1]} : vector<8x32xbf16> to vector<8x4xbf16>
    %cst_38 = arith.constant dense<0.000000e+00> : vector<8x8xf32>
    %67 = tpu.matmul %64, %65, %cst_38 {dimension_numbers = #tpu.dot_dimension_numbers<[1], [1], [0], [0], [0, 0, 1, 0], [], []>} : vector<8x4xbf16>, vector<8x4xbf16>, vector<8x8xf32> -> vector<8x8xf32>
    %c0_39 = arith.constant 0 : index
    %c2 = arith.constant 2 : index
    %68 = vector.load %arg9[%c0_39, %c2] : memref<8x8xf32, #tpu.memory_space<vmem>>, vector<8x1xf32>
    %cst_40 = arith.constant dense<0xFF800000> : vector<8xf32>
    %69 = vector.multi_reduction <maximumf>, %67, %cst_40 [1] : vector<8x8xf32> to vector<8xf32>
    %70 = vector.shape_cast %69 : vector<8xf32> to vector<8x1xf32>
    %71 = arith.maximumf %68, %70 : vector<8x1xf32>
    %72 = arith.subf %68, %71 : vector<8x1xf32>
    %73 = math.exp %72 : vector<8x1xf32>
    %74 = vector.broadcast %71 : vector<8x1xf32> to vector<8x8xf32>
    %75 = arith.subf %67, %74 : vector<8x8xf32>
    %76 = math.exp %75 : vector<8x8xf32>
    %c0_41 = arith.constant 0 : index
    %c2_42 = arith.constant 2 : index
    %77 = vector.load %arg10[%c0_41, %c2_42] : memref<8x8xf32, #tpu.memory_space<vmem>>, vector<8x1xf32>
    %78 = arith.mulf %73, %77 : vector<8x1xf32>
    %cst_43 = arith.constant dense<0.000000e+00> : vector<8xf32>
    %79 = vector.multi_reduction <add>, %76, %cst_43 [1] : vector<8x8xf32> to vector<8xf32>
    %80 = vector.shape_cast %79 : vector<8xf32> to vector<8x1xf32>
    %81 = arith.addf %78, %80 : vector<8x1xf32>
    %c0_44 = arith.constant 0 : index
    %c2_45 = arith.constant 2 : index
    %82 = vector.load %arg10[%c0_44, %c2_45] : memref<8x8xf32, #tpu.memory_space<vmem>>, vector<8x1xf32>
    tpu.vector_store %arg10[%c0_44, %c2_45], %81 {strides = array<i32>} : memref<8x8xf32, #tpu.memory_space<vmem>>, vector<8x1xf32>,
    %83 = arith.truncf %76 : vector<8x8xf32> to vector<8x8xbf16>
    %cst_46 = arith.constant dense<0.000000e+00> : vector<8x4xf32>
    %84 = tpu.matmul %83, %66, %cst_46 {dimension_numbers = #tpu.dot_dimension_numbers<[1], [0], [0], [1], [0, 0, 1, 1], [], []>} : vector<8x8xbf16>, vector<8x4xbf16>, vector<8x4xf32> -> vector<8x4xf32>
    %c0_47 = arith.constant 0 : index
    %c8 = arith.constant 8 : index
    %85 = vector.load %arg11[%c0_47, %c8] : memref<8x32xf32, #tpu.memory_space<vmem>>, vector<8x4xf32>
    %86 = vector.broadcast %73 : vector<8x1xf32> to vector<8x4xf32>
    %87 = arith.mulf %86, %85 : vector<8x4xf32>
    %88 = arith.addf %87, %84 : vector<8x4xf32>
    %c0_48 = arith.constant 0 : index
    %c8_49 = arith.constant 8 : index
    %89 = vector.load %arg11[%c0_48, %c8_49] : memref<8x32xf32, #tpu.memory_space<vmem>>, vector<8x4xf32>
    tpu.vector_store %arg11[%c0_48, %c8_49], %88 {strides = array<i32>} : memref<8x32xf32, #tpu.memory_space<vmem>>, vector<8x4xf32>,
    %c0_50 = arith.constant 0 : index
    %c2_51 = arith.constant 2 : index
    %90 = vector.load %arg9[%c0_50, %c2_51] : memref<8x8xf32, #tpu.memory_space<vmem>>, vector<8x1xf32>
    tpu.vector_store %arg9[%c0_50, %c2_51], %71 {strides = array<i32>} : memref<8x8xf32, #tpu.memory_space<vmem>>, vector<8x1xf32>,
    %91 = vector.extract_strided_slice %5 {offsets = [0, 12], sizes = [8, 4], strides = [1, 1]} : vector<8x32xbf16> to vector<8x4xbf16>
    %92 = vector.extract_strided_slice %7 {offsets = [0, 12], sizes = [8, 4], strides = [1, 1]} : vector<8x32xbf16> to vector<8x4xbf16>
    %93 = vector.extract_strided_slice %9 {offsets = [0, 12], sizes = [8, 4], strides = [1, 1]} : vector<8x32xbf16> to vector<8x4xbf16>
    %cst_52 = arith.constant dense<0.000000e+00> : vector<8x8xf32>
    %94 = tpu.matmul %91, %92, %cst_52 {dimension_numbers = #tpu.dot_dimension_numbers<[1], [1], [0], [0], [0, 0, 1, 0], [], []>} : vector<8x4xbf16>, vector<8x4xbf16>, vector<8x8xf32> -> vector<8x8xf32>
    %c0_53 = arith.constant 0 : index
    %c3 = arith.constant 3 : index
    %95 = vector.load %arg9[%c0_53, %c3] : memref<8x8xf32, #tpu.memory_space<vmem>>, vector<8x1xf32>
    %cst_54 = arith.constant dense<0xFF800000> : vector<8xf32>
    %96 = vector.multi_reduction <maximumf>, %94, %cst_54 [1] : vector<8x8xf32> to vector<8xf32>
    %97 = vector.shape_cast %96 : vector<8xf32> to vector<8x1xf32>
    %98 = arith.maximumf %95, %97 : vector<8x1xf32>
    %99 = arith.subf %95, %98 : vector<8x1xf32>
    %100 = math.exp %99 : vector<8x1xf32>
    %101 = vector.broadcast %98 : vector<8x1xf32> to vector<8x8xf32>
    %102 = arith.subf %94, %101 : vector<8x8xf32>
    %103 = math.exp %102 : vector<8x8xf32>
    %c0_55 = arith.constant 0 : index
    %c3_56 = arith.constant 3 : index
    %104 = vector.load %arg10[%c0_55, %c3_56] : memref<8x8xf32, #tpu.memory_space<vmem>>, vector<8x1xf32>
    %105 = arith.mulf %100, %104 : vector<8x1xf32>
    %cst_57 = arith.constant dense<0.000000e+00> : vector<8xf32>
    %106 = vector.multi_reduction <add>, %103, %cst_57 [1] : vector<8x8xf32> to vector<8xf32>
    %107 = vector.shape_cast %106 : vector<8xf32> to vector<8x1xf32>
    %108 = arith.addf %105, %107 : vector<8x1xf32>
    %c0_58 = arith.constant 0 : index
    %c3_59 = arith.constant 3 : index
    %109 = vector.load %arg10[%c0_58, %c3_59] : memref<8x8xf32, #tpu.memory_space<vmem>>, vector<8x1xf32>
    tpu.vector_store %arg10[%c0_58, %c3_59], %108 {strides = array<i32>} : memref<8x8xf32, #tpu.memory_space<vmem>>, vector<8x1xf32>,
    %110 = arith.truncf %103 : vector<8x8xf32> to vector<8x8xbf16>
    %cst_60 = arith.constant dense<0.000000e+00> : vector<8x4xf32>
    %111 = tpu.matmul %110, %93, %cst_60 {dimension_numbers = #tpu.dot_dimension_numbers<[1], [0], [0], [1], [0, 0, 1, 1], [], []>} : vector<8x8xbf16>, vector<8x4xbf16>, vector<8x4xf32> -> vector<8x4xf32>
    %c0_61 = arith.constant 0 : index
    %c12 = arith.constant 12 : index
    %112 = vector.load %arg11[%c0_61, %c12] : memref<8x32xf32, #tpu.memory_space<vmem>>, vector<8x4xf32>
    %113 = vector.broadcast %100 : vector<8x1xf32> to vector<8x4xf32>
    %114 = arith.mulf %113, %112 : vector<8x4xf32>
    %115 = arith.addf %114, %111 : vector<8x4xf32>
    %c0_62 = arith.constant 0 : index
    %c12_63 = arith.constant 12 : index
    %116 = vector.load %arg11[%c0_62, %c12_63] : memref<8x32xf32, #tpu.memory_space<vmem>>, vector<8x4xf32>
    tpu.vector_store %arg11[%c0_62, %c12_63], %115 {strides = array<i32>} : memref<8x32xf32, #tpu.memory_space<vmem>>, vector<8x4xf32>,
    %c0_64 = arith.constant 0 : index
    %c3_65 = arith.constant 3 : index
    %117 = vector.load %arg9[%c0_64, %c3_65] : memref<8x8xf32, #tpu.memory_space<vmem>>, vector<8x1xf32>
    tpu.vector_store %arg9[%c0_64, %c3_65], %98 {strides = array<i32>} : memref<8x8xf32, #tpu.memory_space<vmem>>, vector<8x1xf32>,
    %118 = vector.extract_strided_slice %5 {offsets = [0, 16], sizes = [8, 4], strides = [1, 1]} : vector<8x32xbf16> to vector<8x4xbf16>
    %119 = vector.extract_strided_slice %7 {offsets = [0, 16], sizes = [8, 4], strides = [1, 1]} : vector<8x32xbf16> to vector<8x4xbf16>
    %120 = vector.extract_strided_slice %9 {offsets = [0, 16], sizes = [8, 4], strides = [1, 1]} : vector<8x32xbf16> to vector<8x4xbf16>
    %cst_66 = arith.constant dense<0.000000e+00> : vector<8x8xf32>
    %121 = tpu.matmul %118, %119, %cst_66 {dimension_numbers = #tpu.dot_dimension_numbers<[1], [1], [0], [0], [0, 0, 1, 0], [], []>} : vector<8x4xbf16>, vector<8x4xbf16>, vector<8x8xf32> -> vector<8x8xf32>
    %c0_67 = arith.constant 0 : index
    %c4_68 = arith.constant 4 : index
    %122 = vector.load %arg9[%c0_67, %c4_68] : memref<8x8xf32, #tpu.memory_space<vmem>>, vector<8x1xf32>
    %cst_69 = arith.constant dense<0xFF800000> : vector<8xf32>
    %123 = vector.multi_reduction <maximumf>, %121, %cst_69 [1] : vector<8x8xf32> to vector<8xf32>
    %124 = vector.shape_cast %123 : vector<8xf32> to vector<8x1xf32>
    %125 = arith.maximumf %122, %124 : vector<8x1xf32>
    %126 = arith.subf %122, %125 : vector<8x1xf32>
    %127 = math.exp %126 : vector<8x1xf32>
    %128 = vector.broadcast %125 : vector<8x1xf32> to vector<8x8xf32>
    %129 = arith.subf %121, %128 : vector<8x8xf32>
    %130 = math.exp %129 : vector<8x8xf32>
    %c0_70 = arith.constant 0 : index
    %c4_71 = arith.constant 4 : index
    %131 = vector.load %arg10[%c0_70, %c4_71] : memref<8x8xf32, #tpu.memory_space<vmem>>, vector<8x1xf32>
    %132 = arith.mulf %127, %131 : vector<8x1xf32>
    %cst_72 = arith.constant dense<0.000000e+00> : vector<8xf32>
    %133 = vector.multi_reduction <add>, %130, %cst_72 [1] : vector<8x8xf32> to vector<8xf32>
    %134 = vector.shape_cast %133 : vector<8xf32> to vector<8x1xf32>
    %135 = arith.addf %132, %134 : vector<8x1xf32>
    %c0_73 = arith.constant 0 : index
    %c4_74 = arith.constant 4 : index
    %136 = vector.load %arg10[%c0_73, %c4_74] : memref<8x8xf32, #tpu.memory_space<vmem>>, vector<8x1xf32>
    tpu.vector_store %arg10[%c0_73, %c4_74], %135 {strides = array<i32>} : memref<8x8xf32, #tpu.memory_space<vmem>>, vector<8x1xf32>,
    %137 = arith.truncf %130 : vector<8x8xf32> to vector<8x8xbf16>
    %cst_75 = arith.constant dense<0.000000e+00> : vector<8x4xf32>
    %138 = tpu.matmul %137, %120, %cst_75 {dimension_numbers = #tpu.dot_dimension_numbers<[1], [0], [0], [1], [0, 0, 1, 1], [], []>} : vector<8x8xbf16>, vector<8x4xbf16>, vector<8x4xf32> -> vector<8x4xf32>
    %c0_76 = arith.constant 0 : index
    %c16 = arith.constant 16 : index
    %139 = vector.load %arg11[%c0_76, %c16] : memref<8x32xf32, #tpu.memory_space<vmem>>, vector<8x4xf32>
    %140 = vector.broadcast %127 : vector<8x1xf32> to vector<8x4xf32>
    %141 = arith.mulf %140, %139 : vector<8x4xf32>
    %142 = arith.addf %141, %138 : vector<8x4xf32>
    %c0_77 = arith.constant 0 : index
    %c16_78 = arith.constant 16 : index
    %143 = vector.load %arg11[%c0_77, %c16_78] : memref<8x32xf32, #tpu.memory_space<vmem>>, vector<8x4xf32>
    tpu.vector_store %arg11[%c0_77, %c16_78], %142 {strides = array<i32>} : memref<8x32xf32, #tpu.memory_space<vmem>>, vector<8x4xf32>,
    %c0_79 = arith.constant 0 : index
    %c4_80 = arith.constant 4 : index
    %144 = vector.load %arg9[%c0_79, %c4_80] : memref<8x8xf32, #tpu.memory_space<vmem>>, vector<8x1xf32>
    tpu.vector_store %arg9[%c0_79, %c4_80], %125 {strides = array<i32>} : memref<8x8xf32, #tpu.memory_space<vmem>>, vector<8x1xf32>,
    %145 = vector.extract_strided_slice %5 {offsets = [0, 20], sizes = [8, 4], strides = [1, 1]} : vector<8x32xbf16> to vector<8x4xbf16>
    %146 = vector.extract_strided_slice %7 {offsets = [0, 20], sizes = [8, 4], strides = [1, 1]} : vector<8x32xbf16> to vector<8x4xbf16>
    %147 = vector.extract_strided_slice %9 {offsets = [0, 20], sizes = [8, 4], strides = [1, 1]} : vector<8x32xbf16> to vector<8x4xbf16>
    %cst_81 = arith.constant dense<0.000000e+00> : vector<8x8xf32>
    %148 = tpu.matmul %145, %146, %cst_81 {dimension_numbers = #tpu.dot_dimension_numbers<[1], [1], [0], [0], [0, 0, 1, 0], [], []>} : vector<8x4xbf16>, vector<8x4xbf16>, vector<8x8xf32> -> vector<8x8xf32>
    %c0_82 = arith.constant 0 : index
    %c5 = arith.constant 5 : index
    %149 = vector.load %arg9[%c0_82, %c5] : memref<8x8xf32, #tpu.memory_space<vmem>>, vector<8x1xf32>
    %cst_83 = arith.constant dense<0xFF800000> : vector<8xf32>
    %150 = vector.multi_reduction <maximumf>, %148, %cst_83 [1] : vector<8x8xf32> to vector<8xf32>
    %151 = vector.shape_cast %150 : vector<8xf32> to vector<8x1xf32>
    %152 = arith.maximumf %149, %151 : vector<8x1xf32>
    %153 = arith.subf %149, %152 : vector<8x1xf32>
    %154 = math.exp %153 : vector<8x1xf32>
    %155 = vector.broadcast %152 : vector<8x1xf32> to vector<8x8xf32>
    %156 = arith.subf %148, %155 : vector<8x8xf32>
    %157 = math.exp %156 : vector<8x8xf32>
    %c0_84 = arith.constant 0 : index
    %c5_85 = arith.constant 5 : index
    %158 = vector.load %arg10[%c0_84, %c5_85] : memref<8x8xf32, #tpu.memory_space<vmem>>, vector<8x1xf32>
    %159 = arith.mulf %154, %158 : vector<8x1xf32>
    %cst_86 = arith.constant dense<0.000000e+00> : vector<8xf32>
    %160 = vector.multi_reduction <add>, %157, %cst_86 [1] : vector<8x8xf32> to vector<8xf32>
    %161 = vector.shape_cast %160 : vector<8xf32> to vector<8x1xf32>
    %162 = arith.addf %159, %161 : vector<8x1xf32>
    %c0_87 = arith.constant 0 : index
    %c5_88 = arith.constant 5 : index
    %163 = vector.load %arg10[%c0_87, %c5_88] : memref<8x8xf32, #tpu.memory_space<vmem>>, vector<8x1xf32>
    tpu.vector_store %arg10[%c0_87, %c5_88], %162 {strides = array<i32>} : memref<8x8xf32, #tpu.memory_space<vmem>>, vector<8x1xf32>,
    %164 = arith.truncf %157 : vector<8x8xf32> to vector<8x8xbf16>
    %cst_89 = arith.constant dense<0.000000e+00> : vector<8x4xf32>
    %165 = tpu.matmul %164, %147, %cst_89 {dimension_numbers = #tpu.dot_dimension_numbers<[1], [0], [0], [1], [0, 0, 1, 1], [], []>} : vector<8x8xbf16>, vector<8x4xbf16>, vector<8x4xf32> -> vector<8x4xf32>
    %c0_90 = arith.constant 0 : index
    %c20 = arith.constant 20 : index
    %166 = vector.load %arg11[%c0_90, %c20] : memref<8x32xf32, #tpu.memory_space<vmem>>, vector<8x4xf32>
    %167 = vector.broadcast %154 : vector<8x1xf32> to vector<8x4xf32>
    %168 = arith.mulf %167, %166 : vector<8x4xf32>
    %169 = arith.addf %168, %165 : vector<8x4xf32>
    %c0_91 = arith.constant 0 : index
    %c20_92 = arith.constant 20 : index
    %170 = vector.load %arg11[%c0_91, %c20_92] : memref<8x32xf32, #tpu.memory_space<vmem>>, vector<8x4xf32>
    tpu.vector_store %arg11[%c0_91, %c20_92], %169 {strides = array<i32>} : memref<8x32xf32, #tpu.memory_space<vmem>>, vector<8x4xf32>,
    %c0_93 = arith.constant 0 : index
    %c5_94 = arith.constant 5 : index
    %171 = vector.load %arg9[%c0_93, %c5_94] : memref<8x8xf32, #tpu.memory_space<vmem>>, vector<8x1xf32>
    tpu.vector_store %arg9[%c0_93, %c5_94], %152 {strides = array<i32>} : memref<8x8xf32, #tpu.memory_space<vmem>>, vector<8x1xf32>,
    %172 = vector.extract_strided_slice %5 {offsets = [0, 24], sizes = [8, 4], strides = [1, 1]} : vector<8x32xbf16> to vector<8x4xbf16>
    %173 = vector.extract_strided_slice %7 {offsets = [0, 24], sizes = [8, 4], strides = [1, 1]} : vector<8x32xbf16> to vector<8x4xbf16>
    %174 = vector.extract_strided_slice %9 {offsets = [0, 24], sizes = [8, 4], strides = [1, 1]} : vector<8x32xbf16> to vector<8x4xbf16>
    %cst_95 = arith.constant dense<0.000000e+00> : vector<8x8xf32>
    %175 = tpu.matmul %172, %173, %cst_95 {dimension_numbers = #tpu.dot_dimension_numbers<[1], [1], [0], [0], [0, 0, 1, 0], [], []>} : vector<8x4xbf16>, vector<8x4xbf16>, vector<8x8xf32> -> vector<8x8xf32>
    %c0_96 = arith.constant 0 : index
    %c6 = arith.constant 6 : index
    %176 = vector.load %arg9[%c0_96, %c6] : memref<8x8xf32, #tpu.memory_space<vmem>>, vector<8x1xf32>
    %cst_97 = arith.constant dense<0xFF800000> : vector<8xf32>
    %177 = vector.multi_reduction <maximumf>, %175, %cst_97 [1] : vector<8x8xf32> to vector<8xf32>
    %178 = vector.shape_cast %177 : vector<8xf32> to vector<8x1xf32>
    %179 = arith.maximumf %176, %178 : vector<8x1xf32>
    %180 = arith.subf %176, %179 : vector<8x1xf32>
    %181 = math.exp %180 : vector<8x1xf32>
    %182 = vector.broadcast %179 : vector<8x1xf32> to vector<8x8xf32>
    %183 = arith.subf %175, %182 : vector<8x8xf32>
    %184 = math.exp %183 : vector<8x8xf32>
    %c0_98 = arith.constant 0 : index
    %c6_99 = arith.constant 6 : index
    %185 = vector.load %arg10[%c0_98, %c6_99] : memref<8x8xf32, #tpu.memory_space<vmem>>, vector<8x1xf32>
    %186 = arith.mulf %181, %185 : vector<8x1xf32>
    %cst_100 = arith.constant dense<0.000000e+00> : vector<8xf32>
    %187 = vector.multi_reduction <add>, %184, %cst_100 [1] : vector<8x8xf32> to vector<8xf32>
    %188 = vector.shape_cast %187 : vector<8xf32> to vector<8x1xf32>
    %189 = arith.addf %186, %188 : vector<8x1xf32>
    %c0_101 = arith.constant 0 : index
    %c6_102 = arith.constant 6 : index
    %190 = vector.load %arg10[%c0_101, %c6_102] : memref<8x8xf32, #tpu.memory_space<vmem>>, vector<8x1xf32>
    tpu.vector_store %arg10[%c0_101, %c6_102], %189 {strides = array<i32>} : memref<8x8xf32, #tpu.memory_space<vmem>>, vector<8x1xf32>,
    %191 = arith.truncf %184 : vector<8x8xf32> to vector<8x8xbf16>
    %cst_103 = arith.constant dense<0.000000e+00> : vector<8x4xf32>
    %192 = tpu.matmul %191, %174, %cst_103 {dimension_numbers = #tpu.dot_dimension_numbers<[1], [0], [0], [1], [0, 0, 1, 1], [], []>} : vector<8x8xbf16>, vector<8x4xbf16>, vector<8x4xf32> -> vector<8x4xf32>
    %c0_104 = arith.constant 0 : index
    %c24 = arith.constant 24 : index
    %193 = vector.load %arg11[%c0_104, %c24] : memref<8x32xf32, #tpu.memory_space<vmem>>, vector<8x4xf32>
    %194 = vector.broadcast %181 : vector<8x1xf32> to vector<8x4xf32>
    %195 = arith.mulf %194, %193 : vector<8x4xf32>
    %196 = arith.addf %195, %192 : vector<8x4xf32>
    %c0_105 = arith.constant 0 : index
    %c24_106 = arith.constant 24 : index
    %197 = vector.load %arg11[%c0_105, %c24_106] : memref<8x32xf32, #tpu.memory_space<vmem>>, vector<8x4xf32>
    tpu.vector_store %arg11[%c0_105, %c24_106], %196 {strides = array<i32>} : memref<8x32xf32, #tpu.memory_space<vmem>>, vector<8x4xf32>,
    %c0_107 = arith.constant 0 : index
    %c6_108 = arith.constant 6 : index
    %198 = vector.load %arg9[%c0_107, %c6_108] : memref<8x8xf32, #tpu.memory_space<vmem>>, vector<8x1xf32>
    tpu.vector_store %arg9[%c0_107, %c6_108], %179 {strides = array<i32>} : memref<8x8xf32, #tpu.memory_space<vmem>>, vector<8x1xf32>,
    %199 = vector.extract_strided_slice %5 {offsets = [0, 28], sizes = [8, 4], strides = [1, 1]} : vector<8x32xbf16> to vector<8x4xbf16>
    %200 = vector.extract_strided_slice %7 {offsets = [0, 28], sizes = [8, 4], strides = [1, 1]} : vector<8x32xbf16> to vector<8x4xbf16>
    %201 = vector.extract_strided_slice %9 {offsets = [0, 28], sizes = [8, 4], strides = [1, 1]} : vector<8x32xbf16> to vector<8x4xbf16>
    %cst_109 = arith.constant dense<0.000000e+00> : vector<8x8xf32>
    %202 = tpu.matmul %199, %200, %cst_109 {dimension_numbers = #tpu.dot_dimension_numbers<[1], [1], [0], [0], [0, 0, 1, 0], [], []>} : vector<8x4xbf16>, vector<8x4xbf16>, vector<8x8xf32> -> vector<8x8xf32>
    %c0_110 = arith.constant 0 : index
    %c7 = arith.constant 7 : index
    %203 = vector.load %arg9[%c0_110, %c7] : memref<8x8xf32, #tpu.memory_space<vmem>>, vector<8x1xf32>
    %cst_111 = arith.constant dense<0xFF800000> : vector<8xf32>
    %204 = vector.multi_reduction <maximumf>, %202, %cst_111 [1] : vector<8x8xf32> to vector<8xf32>
    %205 = vector.shape_cast %204 : vector<8xf32> to vector<8x1xf32>
    %206 = arith.maximumf %203, %205 : vector<8x1xf32>
    %207 = arith.subf %203, %206 : vector<8x1xf32>
    %208 = math.exp %207 : vector<8x1xf32>
    %209 = vector.broadcast %206 : vector<8x1xf32> to vector<8x8xf32>
    %210 = arith.subf %202, %209 : vector<8x8xf32>
    %211 = math.exp %210 : vector<8x8xf32>
    %c0_112 = arith.constant 0 : index
    %c7_113 = arith.constant 7 : index
    %212 = vector.load %arg10[%c0_112, %c7_113] : memref<8x8xf32, #tpu.memory_space<vmem>>, vector<8x1xf32>
    %213 = arith.mulf %208, %212 : vector<8x1xf32>
    %cst_114 = arith.constant dense<0.000000e+00> : vector<8xf32>
    %214 = vector.multi_reduction <add>, %211, %cst_114 [1] : vector<8x8xf32> to vector<8xf32>
    %215 = vector.shape_cast %214 : vector<8xf32> to vector<8x1xf32>
    %216 = arith.addf %213, %215 : vector<8x1xf32>
    %c0_115 = arith.constant 0 : index
    %c7_116 = arith.constant 7 : index
    %217 = vector.load %arg10[%c0_115, %c7_116] : memref<8x8xf32, #tpu.memory_space<vmem>>, vector<8x1xf32>
    tpu.vector_store %arg10[%c0_115, %c7_116], %216 {strides = array<i32>} : memref<8x8xf32, #tpu.memory_space<vmem>>, vector<8x1xf32>,
    %218 = arith.truncf %211 : vector<8x8xf32> to vector<8x8xbf16>
    %cst_117 = arith.constant dense<0.000000e+00> : vector<8x4xf32>
    %219 = tpu.matmul %218, %201, %cst_117 {dimension_numbers = #tpu.dot_dimension_numbers<[1], [0], [0], [1], [0, 0, 1, 1], [], []>} : vector<8x8xbf16>, vector<8x4xbf16>, vector<8x4xf32> -> vector<8x4xf32>
    %c0_118 = arith.constant 0 : index
    %c28 = arith.constant 28 : index
    %220 = vector.load %arg11[%c0_118, %c28] : memref<8x32xf32, #tpu.memory_space<vmem>>, vector<8x4xf32>
    %221 = vector.broadcast %208 : vector<8x1xf32> to vector<8x4xf32>
    %222 = arith.mulf %221, %220 : vector<8x4xf32>
    %223 = arith.addf %222, %219 : vector<8x4xf32>
    %c0_119 = arith.constant 0 : index
    %c28_120 = arith.constant 28 : index
    %224 = vector.load %arg11[%c0_119, %c28_120] : memref<8x32xf32, #tpu.memory_space<vmem>>, vector<8x4xf32>
    tpu.vector_store %arg11[%c0_119, %c28_120], %223 {strides = array<i32>} : memref<8x32xf32, #tpu.memory_space<vmem>>, vector<8x4xf32>,
    %c0_121 = arith.constant 0 : index
    %c7_122 = arith.constant 7 : index
    %225 = vector.load %arg9[%c0_121, %c7_122] : memref<8x8xf32, #tpu.memory_space<vmem>>, vector<8x1xf32>
    tpu.vector_store %arg9[%c0_121, %c7_122], %206 {strides = array<i32>} : memref<8x8xf32, #tpu.memory_space<vmem>>, vector<8x1xf32>,
    %c0_i32_123 = arith.constant 0 : i32
    %226 = arith.cmpi eq, %arg2, %c0_i32_123 : i32
    %227 = arith.extui %226 : i1 to i32
    %c0_i32_124 = arith.constant 0 : i32
    %228 = arith.cmpi ne, %227, %c0_i32_124 : i32
    scf.if %228 {
      %c0_125 = arith.constant 0 : index
      %c0_126 = arith.constant 0 : index
      %229 = vector.load %arg10[%c0_125, %c0_126] : memref<8x8xf32, #tpu.memory_space<vmem>>, vector<8x1xf32>
      %230 = tpu.reciprocal %229 {approx = true} : vector<8x1xf32> -> vector<8x1xf32>
      %c0_127 = arith.constant 0 : index
      %c0_128 = arith.constant 0 : index
      %231 = vector.load %arg11[%c0_127, %c0_128] : memref<8x32xf32, #tpu.memory_space<vmem>>, vector<8x4xf32>
      %232 = vector.broadcast %230 : vector<8x1xf32> to vector<8x4xf32>
      %233 = arith.mulf %231, %232 : vector<8x4xf32>
      %c0_129 = arith.constant 0 : index
      %c0_130 = arith.constant 0 : index
      %234 = vector.load %arg11[%c0_129, %c0_130] : memref<8x32xf32, #tpu.memory_space<vmem>>, vector<8x4xf32>
      tpu.vector_store %arg11[%c0_129, %c0_130], %233 {strides = array<i32>} : memref<8x32xf32, #tpu.memory_space<vmem>>, vector<8x4xf32>,
      %c0_131 = arith.constant 0 : index
      %c1_132 = arith.constant 1 : index
      %235 = vector.load %arg10[%c0_131, %c1_132] : memref<8x8xf32, #tpu.memory_space<vmem>>, vector<8x1xf32>
      %236 = tpu.reciprocal %235 {approx = true} : vector<8x1xf32> -> vector<8x1xf32>
      %c0_133 = arith.constant 0 : index
      %c4_134 = arith.constant 4 : index
      %237 = vector.load %arg11[%c0_133, %c4_134] : memref<8x32xf32, #tpu.memory_space<vmem>>, vector<8x4xf32>
      %238 = vector.broadcast %236 : vector<8x1xf32> to vector<8x4xf32>
      %239 = arith.mulf %237, %238 : vector<8x4xf32>
      %c0_135 = arith.constant 0 : index
      %c4_136 = arith.constant 4 : index
      %240 = vector.load %arg11[%c0_135, %c4_136] : memref<8x32xf32, #tpu.memory_space<vmem>>, vector<8x4xf32>
      tpu.vector_store %arg11[%c0_135, %c4_136], %239 {strides = array<i32>} : memref<8x32xf32, #tpu.memory_space<vmem>>, vector<8x4xf32>,
      %c0_137 = arith.constant 0 : index
      %c2_138 = arith.constant 2 : index
      %241 = vector.load %arg10[%c0_137, %c2_138] : memref<8x8xf32, #tpu.memory_space<vmem>>, vector<8x1xf32>
      %242 = tpu.reciprocal %241 {approx = true} : vector<8x1xf32> -> vector<8x1xf32>
      %c0_139 = arith.constant 0 : index
      %c8_140 = arith.constant 8 : index
      %243 = vector.load %arg11[%c0_139, %c8_140] : memref<8x32xf32, #tpu.memory_space<vmem>>, vector<8x4xf32>
      %244 = vector.broadcast %242 : vector<8x1xf32> to vector<8x4xf32>
      %245 = arith.mulf %243, %244 : vector<8x4xf32>
      %c0_141 = arith.constant 0 : index
      %c8_142 = arith.constant 8 : index
      %246 = vector.load %arg11[%c0_141, %c8_142] : memref<8x32xf32, #tpu.memory_space<vmem>>, vector<8x4xf32>
      tpu.vector_store %arg11[%c0_141, %c8_142], %245 {strides = array<i32>} : memref<8x32xf32, #tpu.memory_space<vmem>>, vector<8x4xf32>,
      %c0_143 = arith.constant 0 : index
      %c3_144 = arith.constant 3 : index
      %247 = vector.load %arg10[%c0_143, %c3_144] : memref<8x8xf32, #tpu.memory_space<vmem>>, vector<8x1xf32>
      %248 = tpu.reciprocal %247 {approx = true} : vector<8x1xf32> -> vector<8x1xf32>
      %c0_145 = arith.constant 0 : index
      %c12_146 = arith.constant 12 : index
      %249 = vector.load %arg11[%c0_145, %c12_146] : memref<8x32xf32, #tpu.memory_space<vmem>>, vector<8x4xf32>
      %250 = vector.broadcast %248 : vector<8x1xf32> to vector<8x4xf32>
      %251 = arith.mulf %249, %250 : vector<8x4xf32>
      %c0_147 = arith.constant 0 : index
      %c12_148 = arith.constant 12 : index
      %252 = vector.load %arg11[%c0_147, %c12_148] : memref<8x32xf32, #tpu.memory_space<vmem>>, vector<8x4xf32>
      tpu.vector_store %arg11[%c0_147, %c12_148], %251 {strides = array<i32>} : memref<8x32xf32, #tpu.memory_space<vmem>>, vector<8x4xf32>,
      %c0_149 = arith.constant 0 : index
      %c4_150 = arith.constant 4 : index
      %253 = vector.load %arg10[%c0_149, %c4_150] : memref<8x8xf32, #tpu.memory_space<vmem>>, vector<8x1xf32>
      %254 = tpu.reciprocal %253 {approx = true} : vector<8x1xf32> -> vector<8x1xf32>
      %c0_151 = arith.constant 0 : index
      %c16_152 = arith.constant 16 : index
      %255 = vector.load %arg11[%c0_151, %c16_152] : memref<8x32xf32, #tpu.memory_space<vmem>>, vector<8x4xf32>
      %256 = vector.broadcast %254 : vector<8x1xf32> to vector<8x4xf32>
      %257 = arith.mulf %255, %256 : vector<8x4xf32>
      %c0_153 = arith.constant 0 : index
      %c16_154 = arith.constant 16 : index
      %258 = vector.load %arg11[%c0_153, %c16_154] : memref<8x32xf32, #tpu.memory_space<vmem>>, vector<8x4xf32>
      tpu.vector_store %arg11[%c0_153, %c16_154], %257 {strides = array<i32>} : memref<8x32xf32, #tpu.memory_space<vmem>>, vector<8x4xf32>,
      %c0_155 = arith.constant 0 : index
      %c5_156 = arith.constant 5 : index
      %259 = vector.load %arg10[%c0_155, %c5_156] : memref<8x8xf32, #tpu.memory_space<vmem>>, vector<8x1xf32>
      %260 = tpu.reciprocal %259 {approx = true} : vector<8x1xf32> -> vector<8x1xf32>
      %c0_157 = arith.constant 0 : index
      %c20_158 = arith.constant 20 : index
      %261 = vector.load %arg11[%c0_157, %c20_158] : memref<8x32xf32, #tpu.memory_space<vmem>>, vector<8x4xf32>
      %262 = vector.broadcast %260 : vector<8x1xf32> to vector<8x4xf32>
      %263 = arith.mulf %261, %262 : vector<8x4xf32>
      %c0_159 = arith.constant 0 : index
      %c20_160 = arith.constant 20 : index
      %264 = vector.load %arg11[%c0_159, %c20_160] : memref<8x32xf32, #tpu.memory_space<vmem>>, vector<8x4xf32>
      tpu.vector_store %arg11[%c0_159, %c20_160], %263 {strides = array<i32>} : memref<8x32xf32, #tpu.memory_space<vmem>>, vector<8x4xf32>,
      %c0_161 = arith.constant 0 : index
      %c6_162 = arith.constant 6 : index
      %265 = vector.load %arg10[%c0_161, %c6_162] : memref<8x8xf32, #tpu.memory_space<vmem>>, vector<8x1xf32>
      %266 = tpu.reciprocal %265 {approx = true} : vector<8x1xf32> -> vector<8x1xf32>
      %c0_163 = arith.constant 0 : index
      %c24_164 = arith.constant 24 : index
      %267 = vector.load %arg11[%c0_163, %c24_164] : memref<8x32xf32, #tpu.memory_space<vmem>>, vector<8x4xf32>
      %268 = vector.broadcast %266 : vector<8x1xf32> to vector<8x4xf32>
      %269 = arith.mulf %267, %268 : vector<8x4xf32>
      %c0_165 = arith.constant 0 : index
      %c24_166 = arith.constant 24 : index
      %270 = vector.load %arg11[%c0_165, %c24_166] : memref<8x32xf32, #tpu.memory_space<vmem>>, vector<8x4xf32>
      tpu.vector_store %arg11[%c0_165, %c24_166], %269 {strides = array<i32>} : memref<8x32xf32, #tpu.memory_space<vmem>>, vector<8x4xf32>,
      %c0_167 = arith.constant 0 : index
      %c7_168 = arith.constant 7 : index
      %271 = vector.load %arg10[%c0_167, %c7_168] : memref<8x8xf32, #tpu.memory_space<vmem>>, vector<8x1xf32>
      %272 = tpu.reciprocal %271 {approx = true} : vector<8x1xf32> -> vector<8x1xf32>
      %c0_169 = arith.constant 0 : index
      %c28_170 = arith.constant 28 : index
      %273 = vector.load %arg11[%c0_169, %c28_170] : memref<8x32xf32, #tpu.memory_space<vmem>>, vector<8x4xf32>
      %274 = vector.broadcast %272 : vector<8x1xf32> to vector<8x4xf32>
      %275 = arith.mulf %273, %274 : vector<8x4xf32>
      %c0_171 = arith.constant 0 : index
      %c28_172 = arith.constant 28 : index
      %276 = vector.load %arg11[%c0_171, %c28_172] : memref<8x32xf32, #tpu.memory_space<vmem>>, vector<8x4xf32>
      tpu.vector_store %arg11[%c0_171, %c28_172], %275 {strides = array<i32>} : memref<8x32xf32, #tpu.memory_space<vmem>>, vector<8x4xf32>,
      %c0_173 = arith.constant 0 : index
      %c0_174 = arith.constant 0 : index
      %277 = vector.load %arg11[%c0_173, %c0_174] : memref<8x32xf32, #tpu.memory_space<vmem>>, vector<8x32xf32>
      %c0_175 = arith.constant 0 : index
      %c0_176 = arith.constant 0 : index
      %c0_177 = arith.constant 0 : index
      %278 = vector.load %arg3[%c0_175, %c0_176, %c0_177] : memref<1x8x32xf32, #tpu.memory_space<vmem>>, vector<1x8x32xf32>
      %279 = vector.shape_cast %278 : vector<1x8x32xf32> to vector<8x32xf32>
      %280 = arith.addf %277, %279 : vector<8x32xf32>
      %cst_178 = arith.constant dense<0.000000e+00> : vector<8xf32>
      %281 = vector.multi_reduction <add>, %280, %cst_178 [1] : vector<8x32xf32> to vector<8xf32>
      %282 = vector.shape_cast %281 : vector<8xf32> to vector<8x1xf32>
      %cst_179 = arith.constant 3.200000e+01 : f32
      %283 = vector.broadcast %cst_179 : f32 to vector<8x1xf32>
      %284 = arith.divf %282, %283 : vector<8x1xf32>
      %285 = vector.broadcast %284 : vector<8x1xf32> to vector<8x32xf32>
      %286 = arith.subf %280, %285 : vector<8x32xf32>
      %287 = arith.mulf %286, %286 : vector<8x32xf32>
      %cst_180 = arith.constant dense<0.000000e+00> : vector<8xf32>
      %288 = vector.multi_reduction <add>, %287, %cst_180 [1] : vector<8x32xf32> to vector<8xf32>
      %289 = vector.shape_cast %288 : vector<8xf32> to vector<8x1xf32>
      %cst_181 = arith.constant 3.200000e+01 : f32
      %290 = vector.broadcast %cst_181 : f32 to vector<8x1xf32>
      %291 = arith.divf %289, %290 : vector<8x1xf32>
      %292 = vector.broadcast %284 : vector<8x1xf32> to vector<8x32xf32>
      %293 = arith.subf %280, %292 : vector<8x32xf32>
      %cst_182 = arith.constant 9.99999974E-6 : f32
      %294 = vector.broadcast %cst_182 : f32 to vector<8x1xf32>
      %295 = arith.addf %291, %294 : vector<8x1xf32>
      %296 = math.rsqrt %295 : vector<8x1xf32>
      %297 = vector.broadcast %296 : vector<8x1xf32> to vector<8x32xf32>
      %298 = arith.mulf %293, %297 : vector<8x32xf32>
      %c0_183 = arith.constant 0 : index
      %c0_184 = arith.constant 0 : index
      %299 = vector.load %arg6[%c0_183, %c0_184] : memref<1x32xf32, #tpu.memory_space<vmem>>, vector<1x32xf32>
      %300 = vector.broadcast %299 : vector<1x32xf32> to vector<8x32xf32>
      %301 = arith.mulf %298, %300 : vector<8x32xf32>
      %c0_185 = arith.constant 0 : index
      %c0_186 = arith.constant 0 : index
      %302 = vector.load %arg7[%c0_185, %c0_186] : memref<1x32xf32, #tpu.memory_space<vmem>>, vector<1x32xf32>
      %303 = vector.broadcast %302 : vector<1x32xf32> to vector<8x32xf32>
      %304 = arith.addf %301, %303 : vector<8x32xf32>
      %c0_187 = arith.constant 0 : index
      %c0_188 = arith.constant 0 : index
      %c0_189 = arith.constant 0 : index
      %305 = vector.load %arg8[%c0_187, %c0_188, %c0_189] : memref<1x8x32xf32, #tpu.memory_space<vmem>>, vector<1x8x32xf32>
      %306 = vector.shape_cast %305 : vector<1x8x32xf32> to vector<8x32xf32>
      %307 = vector.shape_cast %304 : vector<8x32xf32> to vector<1x8x32xf32>
      tpu.vector_store %arg8[%c0_187, %c0_188, %c0_189], %307 {strides = array<i32>} : memref<1x8x32xf32, #tpu.memory_space<vmem>>, vector<1x8x32xf32>,
    } else {
    }
    return
  }
  func.func @transform_0(%arg0: i32, %arg1: i32, %arg2: i32) -> (i32, i32, i32) {
    %c0_i32 = arith.constant 0 : i32
    %c0_i32_0 = arith.constant 0 : i32
    return %arg0, %arg1, %c0_i32 : i32, i32, i32
  }
  func.func @transform_1(%arg0: i32, %arg1: i32, %arg2: i32) -> (i32, i32, i32) {
    %c0_i32 = arith.constant 0 : i32
    %c0_i32_0 = arith.constant 0 : i32
    return %arg0, %arg2, %c0_i32 : i32, i32, i32
  }
  func.func @transform_2(%arg0: i32, %arg1: i32, %arg2: i32) -> (i32, i32, i32) {
    %c0_i32 = arith.constant 0 : i32
    %c0_i32_0 = arith.constant 0 : i32
    return %arg0, %arg2, %c0_i32 : i32, i32, i32
  }
  func.func @transform_3(%arg0: i32, %arg1: i32, %arg2: i32) -> (i32, i32) {
    %c0_i32 = arith.constant 0 : i32
    %c0_i32_0 = arith.constant 0 : i32
    %c0_i32_1 = arith.constant 0 : i32
    return %c0_i32, %c0_i32_0 : i32, i32
  }
  func.func @transform_4(%arg0: i32, %arg1: i32, %arg2: i32) -> (i32, i32) {
    %c0_i32 = arith.constant 0 : i32
    %c0_i32_0 = arith.constant 0 : i32
    %c0_i32_1 = arith.constant 0 : i32
    return %c0_i32, %c0_i32_0 : i32, i32
  }
  func.func @transform_5(%arg0: i32, %arg1: i32, %arg2: i32) -> (i32, i32, i32) {
    %c0_i32 = arith.constant 0 : i32
    %c0_i32_0 = arith.constant 0 : i32
    return %arg0, %arg1, %c0_i32 : i32, i32, i32
  }
}

module attributes {stable_mosaic.version = 11 : i64} {
  func.func @_linear_relu_kernel(%arg0: i32, %arg1: i32, %arg2: i32, %arg3: memref<1x8x32xf32, #tpu.memory_space<vmem>>, %arg4: memref<32x32xbf16, #tpu.memory_space<vmem>>, %arg5: memref<1x32xf32, #tpu.memory_space<vmem>>, %arg6: memref<1x8x32xf32, #tpu.memory_space<vmem>>) attributes {dimension_semantics = [#tpu.dimension_semantics<parallel>, #tpu.dimension_semantics<parallel>, #tpu.dimension_semantics<parallel>], iteration_bounds = array<i64: 2, 1, 1>, scalar_prefetch = 0 : i64, scratch_operands = 0 : i64, tpu.core_type = #tpu.core_type<tc>, window_params = [{transform_indices = @transform_0, window_bounds = array<i64: 1, 8, 32>}, {transform_indices = @transform_1, window_bounds = array<i64: 32, 32>}, {transform_indices = @transform_2, window_bounds = array<i64: 1, 32>}, {transform_indices = @transform_3, window_bounds = array<i64: 1, 8, 32>}]} {
    %c0 = arith.constant 0 : index
    %c0_0 = arith.constant 0 : index
    %c0_1 = arith.constant 0 : index
    %0 = vector.load %arg3[%c0, %c0_0, %c0_1] : memref<1x8x32xf32, #tpu.memory_space<vmem>>, vector<1x8x32xf32>
    %1 = vector.shape_cast %0 : vector<1x8x32xf32> to vector<8x32xf32>
    %2 = arith.truncf %1 : vector<8x32xf32> to vector<8x32xbf16>
    %c0_2 = arith.constant 0 : index
    %c0_3 = arith.constant 0 : index
    %3 = vector.load %arg4[%c0_2, %c0_3] : memref<32x32xbf16, #tpu.memory_space<vmem>>, vector<32x32xbf16>
    %cst = arith.constant dense<0.000000e+00> : vector<8x32xf32>
    %4 = tpu.matmul %2, %3, %cst {dimension_numbers = #tpu.dot_dimension_numbers<[1], [0], [0], [1], [0, 0, 1, 1], [], []>} : vector<8x32xbf16>, vector<32x32xbf16>, vector<8x32xf32> -> vector<8x32xf32>
    %c0_4 = arith.constant 0 : index
    %c0_5 = arith.constant 0 : index
    %5 = vector.load %arg5[%c0_4, %c0_5] : memref<1x32xf32, #tpu.memory_space<vmem>>, vector<1x32xf32>
    %6 = vector.broadcast %5 : vector<1x32xf32> to vector<8x32xf32>
    %7 = arith.addf %4, %6 : vector<8x32xf32>
    %cst_6 = arith.constant 0.000000e+00 : f32
    %8 = vector.broadcast %cst_6 : f32 to vector<8x32xf32>
    %9 = arith.maximumf %7, %8 : vector<8x32xf32>
    %c0_7 = arith.constant 0 : index
    %c0_8 = arith.constant 0 : index
    %c0_9 = arith.constant 0 : index
    %10 = vector.load %arg6[%c0_7, %c0_8, %c0_9] : memref<1x8x32xf32, #tpu.memory_space<vmem>>, vector<1x8x32xf32>
    %11 = vector.shape_cast %10 : vector<1x8x32xf32> to vector<8x32xf32>
    %12 = vector.shape_cast %9 : vector<8x32xf32> to vector<1x8x32xf32>
    tpu.vector_store %arg6[%c0_7, %c0_8, %c0_9], %12 {strides = array<i32>} : memref<1x8x32xf32, #tpu.memory_space<vmem>>, vector<1x8x32xf32>,
    return
  }
  func.func @transform_0(%arg0: i32, %arg1: i32, %arg2: i32) -> (i32, i32, i32) {
    %c0_i32 = arith.constant 0 : i32
    %c0_i32_0 = arith.constant 0 : i32
    return %arg0, %arg1, %c0_i32 : i32, i32, i32
  }
  func.func @transform_1(%arg0: i32, %arg1: i32, %arg2: i32) -> (i32, i32) {
    %c0_i32 = arith.constant 0 : i32
    %c0_i32_0 = arith.constant 0 : i32
    return %c0_i32, %arg2 : i32, i32
  }
  func.func @transform_2(%arg0: i32, %arg1: i32, %arg2: i32) -> (i32, i32) {
    %c0_i32 = arith.constant 0 : i32
    %c0_i32_0 = arith.constant 0 : i32
    return %c0_i32, %arg2 : i32, i32
  }
  func.func @transform_3(%arg0: i32, %arg1: i32, %arg2: i32) -> (i32, i32, i32) {
    %c0_i32 = arith.constant 0 : i32
    return %arg0, %arg1, %arg2 : i32, i32, i32
  }
}

</mosaic_0001>

<bundles_post_ra>
// kernel: multi_head_attention.5
= control target key start
LH: loop header
LB: loop body
LE: loop exit
PB: predicated region body
PF: predicated region fallthrough
CT: control target
= control target key end

     0   :  { %8 = vsyncpa [#allocation3], 0  ;;  %s779_s0 = inlined_call_operand.hbm [shape: f32[2,8,32], index: 0, kind: input, shape index: {}]   ;;  %s780_s1 = inlined_call_operand.hbm [shape: bf16[32,32], index: 1, kind: input, shape index: {}]   ;;  %s781_s2 = inlined_call_operand.vmem [shape: f32[1,32], index: 2, kind: input, shape index: {}]   ;;  %s782_s3 = inlined_call_operand.vmem [shape: bf16[2,8,32], index: 3, kind: output, shape index: {}]  }
   0x1   :  { %10 = vsyncpa [#allocation3 + $0x1], 0 }
   0x2   :  { %11 = vsyncpa [#allocation5], 0  ;;  %s662_s12 = smov 0   ;;  %s664_s13 = smov 0  }
   0x3   :  { %s666_s14 = smov 0   ;;  %s668_s15 = smov 0  }
   0x4   :  { %s670_s16 = smov 0   ;;  %s672_s17 = smov 0  }
   0x5 LB: > { %s429_s18 = sadd.s32 4294967295, %s637_s17   ;;  %p431_p0 = scmp.ge.s32.totalorder %s637_s17, 1  ;;  %s637_s17 = sphi %s672_s17, %s17_s17   ;;  %s633_s16 = sphi %s670_s16, %s791_s16   ;;  %s629_s15 = sphi %s668_s15, %s790_s15   ;;  %s625_s14 = sphi %s666_s14, %s789_s14   ;;  %s621_s13 = sphi %s664_s13, %s788_s13   ;;  %s617_s12 = sphi %s662_s12, %s787_s12  }
   0x6   : > { %p694_p1 = scmp.eq.s32.totalorder %s429_s18, 0  ;;  %p151_p2 = scmp.lt.s32.totalorder %s637_s17, 3 }
   0x7   : > { %s164_s22 = sshll.u32 %s780_s1, 4  ;;  %s639_s24 = smov [#allocation4]   ;;  %s165_s22 = int_to_ptr.hbm [resolvable:$true] %s164_s22 }
   0x8   : > { %p702_p3 = pnand %p431_p0, %p151_p2  ;;  %s166_s25 = sshll.u32 %s639_s24, 4  ;;  %s167_s25 = int_to_ptr.vmem [resolvable:$true] %s166_s25 }
   0x9   : > { %s640_s26 = smov 64   ;;  %s641_s27 = smov 4  }
   0xa   : > { %p460_p4 = pneg %p702_p3  ;;  %s36_s28 = sadd.s32 1, %s633_s16 }
   0xb   : > { %p38_p6 = scmp.ge.s32.totalorder %s36_s28, 2  ;;  %p52_p7 = scmp.ne.s32.totalorder %s625_s14, %s621_s13 }
   0xc   : > { %p461_p5 = pnand %p460_p4, %p694_p1  ;;  %p53_p8 = scmp.eq.s32.totalorder %s637_s17, 0 }
   0xd   : > { %s793_s28 = smov (%p38_p6, %s36_s28), 0  ;;  %s45_s29 = sadd.s32 1, %s625_s14 }
   0xe   : > { %463 = dma.hbm_to_vmem [thread:$0]  (!%p461_p5), %s165_s22, 256, %s167_s25, [#allocation5], %s640_s26, %s640_s26, %s641_s27  }
   0xf   : > { %p58_p9 = scmp.ne.s32.totalorder %s621_s13, %s617_s12  ;;  %s40_s30 = ssub.s32 %s633_s16, %s793_s28 }
  0x10   : > { %p721_p10 = por %p53_p8, %p52_p7  ;;  %p43_p11 = scmp.eq.s32.totalorder %s40_s30, 0 }
  0x11   : > { %p727_p12 = por %p694_p1, %p58_p9  ;;  %s186_s6 = sand.u32 1, %s625_s14  }
  0x12   : > { %s436_s7 = sshll.u32 %s633_s16, 3  ;;  %p469_p13 = scmp.lt.s32.totalorder %s637_s17, 2 }
  0x13   : > { %s734_s8 = scalar_select %p43_p11, %s625_s14, %s45_s29  }
  0x14   : > { %s435_s9 = sshll.u32 %s186_s6, 3  ;;  %s195_s12 = scalar_lea.hbm %s779_s0, %s436_s7 }
  0x15   : > { %s197_s18 = sshll.u32 %s195_s12, 4  ;;  %s190_s20 = scalar_lea.vmem [#allocation2], %s435_s9  ;;  %s198_s18 = int_to_ptr.hbm [resolvable:$true] %s197_s18 }
  0x16   : > { %s199_s21 = sshll.u32 %s190_s20, 4  ;;  %p465_p0 = pnand %p469_p13, %p721_p10  ;;  %s200_s21 = int_to_ptr.vmem [resolvable:$true] %s199_s21 }
  0x17   : > { %s187_s22 = scalar_lea.sflag [#allocation3], %s186_s6  ;;  %208 = sbr.rel (%p702_p3) target bundleno = 173 (0xad), region = 32 }
  0x18   : > { %467 = dma.hbm_to_vmem [thread:$0]  (!%p465_p0), %s198_s18, 128, %s200_s21, %s187_s22  }
  0x19   : > { %s210_s24 = sand.u32 (!%p702_p3), 1, %s621_s13  }
  0x1a   : > { %s438_s25 = sshll.u32 (!%p702_p3), %s210_s24, 3  ;;  %s211_s26 = scalar_lea.sflag (!%p702_p3), [#allocation3], %s210_s24 }
  0x1b   : > { %s214_s27 = scalar_lea.vmem (!%p702_p3), [#allocation2], %s438_s25 }
  0x1c   : > { %608 = dma.done.wait (%p727_p12), %s211_s26, 128  }
  0x1d   : > { %610 = vsyncadd (%p727_p12), %s211_s26, 4294967168 }
  0x1e   : > { %612 = dma.done.wait (%p694_p1), [#allocation5], 256  }
  0x1f   : > { %614 = vsyncadd (%p694_p1), [#allocation5], 4294967040  ;;  %v453_v0 = vld [vmem:[#allocation4 + $0x8] sm:$0xff]  ;;  %v452_v1 = vld [vmem:[#allocation4] sm:$0xff]  ;;  %vm287_vm0 = vcmask 261120   ;;  %p254_p2 = scmp.lt.s32.totalorder %s629_s15, 1 }
  0x20   : > { %297 = vmatpush.bf16.msra.mxu0 %v453_v0  ;;  %v265_v2 = vld [vmem:[%s214_s27] sm:$0xff]  ;;  %vm306_vm1 = vcmask 257024  }
  0x21   : > { %v266_v3 = vpack.c.bf16 %v265_v2, %v265_v2  ;;  %s795_s15 = smov (!%p254_p2, %s629_s15), 1  ;;  %v522_v4 = vld [vmem:[%s781_s2] ss:$0 sm:$0xff] }
  0x22   : > { %s440_s30 = sshll.u32 %s795_s15, 2 }
  0x23   : > { %s263_s5 = scalar_lea.vmem %s782_s3, %s440_s30 }
  0x24   : > { %298 = vmatpush.bf16.msra.mxu0 %v452_v1 }
  0x27   : > { %449 = vmatmul.msk.bf16.vlgmr.msra.gmra.mxu0 %vm287_vm0, %v266_v3 }
  0xa4   : > { %v300_v5 = vpop.f32.mrf.mxu0 }
  0xa5   : > { %v301_v6 = vadd.f32 %v522_v4, %v300_v5 }
  0xa7   : > { %v304_v7 = vmax.f32 %v301_v6, 0.0 }
  0xa9   : > { %v305_v8 = vpack.c.bf16 %v304_v7, %v304_v7 }
  0xab   : > { %307 = vst.msk [vmem:[%s263_s5] sm:$0xf] %vm306_vm1, %v305_v8 }
  0xac   : > { %v302_v9 = vpop.f32.mrf.mxu0 }
  0xad PF: > { %s17_s17 = sadd.s32 1, %s637_s17   ;;  %s787_s12 = smov %s621_s13 }
  0xae   : > { %p14_p1 = scmp.ge.s32.totalorder %s17_s17, 4   ;;  %s788_s13 = smov %s625_s14 }
  0xaf   : > { %s789_s14 = smov %s734_s8  ;;  %s790_s15 = smov %s633_s16 }
  0xb0   : > { %s791_s16 = smov %s793_s28  ;;  %16 = sbr.rel (!%p14_p1) target bundleno = 5 (0x5), region = 80 }
  0xb5   :  { %339 = vsyncpa [#allocation3], 1 }
  0xb6   :  { %341 = vsyncpa [#allocation3 + $0x1], 1 }
  0xb7   :  { %342 = vsyncpa [#allocation5], 1 }

// kernel: multi_head_attention.4
= control target key start
LH: loop header
LB: loop body
LE: loop exit
PB: predicated region body
PF: predicated region fallthrough
CT: control target
= control target key end

     0   :  { %8 = vsyncpa [#allocation3], 0  ;;  %s777_s0 = inlined_call_operand.hbm [shape: f32[2,8,32], index: 0, kind: input, shape index: {}]   ;;  %s778_s1 = inlined_call_operand.hbm [shape: bf16[32,32], index: 1, kind: input, shape index: {}]   ;;  %s779_s2 = inlined_call_operand.vmem [shape: f32[1,32], index: 2, kind: input, shape index: {}]   ;;  %s780_s3 = inlined_call_operand.vmem [shape: f32[2,8,32], index: 3, kind: output, shape index: {}]  }
   0x1   :  { %10 = vsyncpa [#allocation3 + $0x1], 0 }
   0x2   :  { %11 = vsyncpa [#allocation5], 0  ;;  %s660_s12 = smov 0   ;;  %s662_s13 = smov 0  }
   0x3   :  { %s664_s14 = smov 0   ;;  %s666_s15 = smov 0  }
   0x4   :  { %s668_s16 = smov 0   ;;  %s670_s17 = smov 0  }
   0x5 LB: > { %s427_s18 = sadd.s32 4294967295, %s635_s17   ;;  %p429_p0 = scmp.ge.s32.totalorder %s635_s17, 1  ;;  %s635_s17 = sphi %s670_s17, %s17_s17   ;;  %s631_s16 = sphi %s668_s16, %s789_s16   ;;  %s627_s15 = sphi %s666_s15, %s788_s15   ;;  %s623_s14 = sphi %s664_s14, %s787_s14   ;;  %s619_s13 = sphi %s662_s13, %s786_s13   ;;  %s615_s12 = sphi %s660_s12, %s785_s12  }
   0x6   : > { %p692_p1 = scmp.eq.s32.totalorder %s427_s18, 0  ;;  %p151_p2 = scmp.lt.s32.totalorder %s635_s17, 3 }
   0x7   : > { %s164_s22 = sshll.u32 %s778_s1, 4  ;;  %s637_s24 = smov [#allocation4]   ;;  %s165_s22 = int_to_ptr.hbm [resolvable:$true] %s164_s22 }
   0x8   : > { %p700_p3 = pnand %p429_p0, %p151_p2  ;;  %s166_s25 = sshll.u32 %s637_s24, 4  ;;  %s167_s25 = int_to_ptr.vmem [resolvable:$true] %s166_s25 }
   0x9   : > { %s638_s26 = smov 64   ;;  %s639_s27 = smov 4  }
   0xa   : > { %p458_p4 = pneg %p700_p3  ;;  %s36_s28 = sadd.s32 1, %s631_s16 }
   0xb   : > { %p38_p6 = scmp.ge.s32.totalorder %s36_s28, 2  ;;  %p52_p7 = scmp.ne.s32.totalorder %s623_s14, %s619_s13 }
   0xc   : > { %p459_p5 = pnand %p458_p4, %p692_p1  ;;  %p53_p8 = scmp.eq.s32.totalorder %s635_s17, 0 }
   0xd   : > { %s791_s28 = smov (%p38_p6, %s36_s28), 0  ;;  %s45_s29 = sadd.s32 1, %s623_s14 }
   0xe   : > { %461 = dma.hbm_to_vmem [thread:$0]  (!%p459_p5), %s165_s22, 256, %s167_s25, [#allocation5], %s638_s26, %s638_s26, %s639_s27  }
   0xf   : > { %p58_p9 = scmp.ne.s32.totalorder %s619_s13, %s615_s12  ;;  %s40_s30 = ssub.s32 %s631_s16, %s791_s28 }
  0x10   : > { %p719_p10 = por %p53_p8, %p52_p7  ;;  %p43_p11 = scmp.eq.s32.totalorder %s40_s30, 0 }
  0x11   : > { %p725_p12 = por %p692_p1, %p58_p9  ;;  %s186_s6 = sand.u32 1, %s623_s14  }
  0x12   : > { %s434_s7 = sshll.u32 %s631_s16, 3  ;;  %p467_p13 = scmp.lt.s32.totalorder %s635_s17, 2 }
  0x13   : > { %s732_s8 = scalar_select %p43_p11, %s623_s14, %s45_s29  }
  0x14   : > { %s433_s9 = sshll.u32 %s186_s6, 3  ;;  %s195_s12 = scalar_lea.hbm %s777_s0, %s434_s7 }
  0x15   : > { %s197_s18 = sshll.u32 %s195_s12, 4  ;;  %s190_s20 = scalar_lea.vmem [#allocation2], %s433_s9  ;;  %s198_s18 = int_to_ptr.hbm [resolvable:$true] %s197_s18 }
  0x16   : > { %s199_s21 = sshll.u32 %s190_s20, 4  ;;  %p463_p0 = pnand %p467_p13, %p719_p10  ;;  %s200_s21 = int_to_ptr.vmem [resolvable:$true] %s199_s21 }
  0x17   : > { %s187_s22 = scalar_lea.sflag [#allocation3], %s186_s6  ;;  %208 = sbr.rel (%p700_p3) target bundleno = 173 (0xad), region = 32 }
  0x18   : > { %465 = dma.hbm_to_vmem [thread:$0]  (!%p463_p0), %s198_s18, 128, %s200_s21, %s187_s22  }
  0x19   : > { %s210_s24 = sand.u32 (!%p700_p3), 1, %s619_s13  }
  0x1a   : > { %s436_s25 = sshll.u32 (!%p700_p3), %s210_s24, 3  ;;  %s211_s26 = scalar_lea.sflag (!%p700_p3), [#allocation3], %s210_s24 }
  0x1b   : > { %s214_s27 = scalar_lea.vmem (!%p700_p3), [#allocation2], %s436_s25 }
  0x1c   : > { %606 = dma.done.wait (%p725_p12), %s211_s26, 128  }
  0x1d   : > { %608 = vsyncadd (%p725_p12), %s211_s26, 4294967168 }
  0x1e   : > { %610 = dma.done.wait (%p692_p1), [#allocation5], 256  }
  0x1f   : > { %612 = vsyncadd (%p692_p1), [#allocation5], 4294967040  ;;  %v451_v0 = vld [vmem:[#allocation4 + $0x8] sm:$0xff]  ;;  %v450_v1 = vld [vmem:[#allocation4] sm:$0xff]  ;;  %vm287_vm0 = vcmask 261120   ;;  %p254_p2 = scmp.lt.s32.totalorder %s627_s15, 1 }
  0x20   : > { %297 = vmatpush.bf16.msra.mxu0 %v451_v0  ;;  %v265_v2 = vld [vmem:[%s214_s27] sm:$0xff] }
  0x21   : > { %v266_v3 = vpack.c.bf16 %v265_v2, %v265_v2  ;;  %s793_s15 = smov (!%p254_p2, %s627_s15), 1  ;;  %v520_v4 = vld [vmem:[%s779_s2] ss:$0 sm:$0xff] }
  0x22   : > { %s438_s30 = sshll.u32 %s793_s15, 3 }
  0x23   : > { %s263_s5 = scalar_lea.vmem %s780_s3, %s438_s30 }
  0x24   : > { %298 = vmatpush.bf16.msra.mxu0 %v450_v1 }
  0x27   : > { %447 = vmatmul.msk.bf16.vlgmr.msra.gmra.mxu0 %vm287_vm0, %v266_v3 }
  0xa4   : > { %v300_v5 = vpop.f32.mrf.mxu0 }
  0xa5   : > { %v301_v6 = vadd.f32 %v520_v4, %v300_v5 }
  0xa7   : > { %v304_v7 = vmax.f32 %v301_v6, 0.0 }
  0xa9   : > { %305 = vst.msk [vmem:[%s263_s5] sm:$0xff] %vm287_vm0, %v304_v7 }
  0xac   : > { %v302_v8 = vpop.f32.mrf.mxu0 }
  0xad PF: > { %s17_s17 = sadd.s32 1, %s635_s17   ;;  %s785_s12 = smov %s619_s13 }
  0xae   : > { %p14_p1 = scmp.ge.s32.totalorder %s17_s17, 4   ;;  %s786_s13 = smov %s623_s14 }
  0xaf   : > { %s787_s14 = smov %s732_s8  ;;  %s788_s15 = smov %s631_s16 }
  0xb0   : > { %s789_s16 = smov %s791_s28  ;;  %16 = sbr.rel (!%p14_p1) target bundleno = 5 (0x5), region = 80 }
  0xb5   :  { %337 = vsyncpa [#allocation3], 1 }
  0xb6   :  { %339 = vsyncpa [#allocation3 + $0x1], 1 }
  0xb7   :  { %340 = vsyncpa [#allocation5], 1 }

// kernel: multi_head_attention.7
= control target key start
LH: loop header
LB: loop body
LE: loop exit
PB: predicated region body
PF: predicated region fallthrough
CT: control target
= control target key end

     0   :  { %10 = vsyncpa [#allocation6], 0  ;;  %s1969_s0 = inlined_call_operand.vmem [shape: f32[2,8,32], index: 0, kind: input, shape index: {}]   ;;  %s1970_s1 = inlined_call_operand.vmem [shape: bf16[2,8,32], index: 1, kind: input, shape index: {}]   ;;  %s1971_s2 = inlined_call_operand.vmem [shape: bf16[2,8,32], index: 2, kind: input, shape index: {}]   ;;  %s1972_s3 = inlined_call_operand.vmem [shape: f32[1,32], index: 3, kind: input, shape index: {}]   ;;  %s1973_s4 = inlined_call_operand.vmem [shape: f32[1,32], index: 4, kind: input, shape index: {}]   ;;  %s1974_s5 = inlined_call_operand.hbm [shape: f32[2,8,32], index: 5, kind: output, shape index: {}]  }
   0x1   :  { %12 = vsyncpa [#allocation6 + $0x1], 0  ;;  %s1552_s18 = smov 0   ;;  %s1554_s19 = smov 0  }
   0x2   :  { %s1556_s20 = smov 0   ;;  %s1558_s21 = smov 0  }
   0x3   :  { %s1560_s22 = smov 0   ;;  %s1562_s23 = smov 0  }
   0x4 LB: > { %s1243_s24 = sadd.s32 4294967295, %s1495_s23   ;;  %s1244_s25 = sadd.s32 4294967294, %s1495_s23   ;;  %s1495_s23 = sphi %s1562_s23, %s18_s23   ;;  %s1491_s22 = sphi %s1560_s22, %s1981_s22   ;;  %s1487_s21 = sphi %s1558_s21, %s1980_s21   ;;  %s1483_s20 = sphi %s1556_s20, %s1979_s20   ;;  %s1479_s19 = sphi %s1554_s19, %s1978_s19   ;;  %s1475_s18 = sphi %s1552_s18, %s1977_s18  }
   0x5   : > { %s37_s26 = sadd.s32 1, %s1491_s22  ;;  %s172_s27 = sadd.s32 1, %s1483_s20 }
   0x6   : > { %p39_p0 = scmp.ge.s32.totalorder %s37_s26, 2  ;;  %p182_p1 = scmp.ne.s32.totalorder %s1483_s20, %s1479_s19 }
   0x7   : > { %p183_p2 = scmp.eq.s32.totalorder %s1243_s24, 1  ;;  %p188_p3 = scmp.ne.s32.totalorder %s1479_s19, %s1475_s18 }
   0x8   : > { %s1983_s26 = smov (%p39_p0, %s37_s26), 0  ;;  %p189_p5 = scmp.eq.s32.totalorder %s1244_s25, 1 }
   0x9   : > { %p1592_p4 = por %p183_p2, %p182_p1  ;;  %s167_s29 = ssub.s32 %s1491_s22, %s1983_s26 }
   0xa   : > { %p1247_p6 = scmp.ge.s32.totalorder %s1495_s23, 1  ;;  %p170_p7 = scmp.eq.s32.totalorder %s167_s29, 0 }
   0xb   : > { %p1599_p8 = por %p189_p5, %p188_p3  ;;  %p243_p9 = scmp.lt.s32.totalorder %s1495_s23, 3 }
   0xc   : > { %s1605_s6 = scalar_select %p170_p7, %s1483_s20, %s172_s27  }
   0xd   : > { %p244_p10 = pnand %p1247_p6, %p243_p9 }
   0xe   : > { %p287_p11 = scmp.lt.s32.totalorder (!%p244_p10), %s1487_s21, 1  ;;  %s1498_s16 = smov (!%p244_p10), 120  }
   0xf   : > { %247 = sbr.rel (%p244_p10) target bundleno = 1611 (0x64b), region = 40  ;;  %s1499_s17 = smov (!%p244_p10), 124  }
  0x10   : > { %s1500_s24 = smov (!%p244_p10), 116   ;;  %s1501_s25 = smov (!%p244_p10), 108  }
  0x11   : > { %s1502_s27 = smov (!%p244_p10), 112   ;;  %s1505_s29 = smov (!%p244_p10), 104  }
  0x12   : > { %s1516_s13 = smov (!%p244_p10), 12   ;;  %s1517_s14 = smov (!%p244_p10), 20  }
  0x14   : > { %s1609_s7 = scalar_select %p287_p11, %s1487_s21, 1  ;;  %vm322_vm0 = vcmask 31744   ;;  %vm313_vm1 = vcmask 64512   ;;  %v1497_v4 = vmov -inf   ;;  %v1503_v12 = vmov 0  }
  0x15   : > { %314 = vst.msk [vmem:[#allocation2] sm:$0xff] %vm313_vm1, %v1497_v4  ;;  %1352 = vset.pattern.permute.xlu1 %v1503_v12  ;;  %v1504_v13 = vmov 0.0   ;;  %vm365_vm2 = vcmask 7168   ;;  %vm371_vm3 = vcmask 1043456   ;;  %vm449_vm4 = vcmask 15368  }
  0x16   : > { %s1250_s8 = sshll.u32 %s1609_s7, 2  ;;  %s1249_s9 = sshll.u32 %s1609_s7, 3  ;;  %315 = vst.msk [vmem:[#allocation3] sm:$0xff] %vm313_vm1, %v1504_v13  ;;  %vm536_vm5 = vcmask 23568   ;;  %vm620_vm6 = vcmask 31768   ;;  %vm704_vm7 = vcmask 39968  }
  0x17   : > { %s300_s12 = scalar_lea.vmem %s1970_s1, %s1250_s8  ;;  %s293_s15 = scalar_lea.vmem %s1969_s0, %s1249_s9  ;;  %vm788_vm8 = vcmask 48168   ;;  %vm872_vm9 = vcmask 56368   ;;  %vm956_vm10 = vcmask 64568   ;;  %vm316_vm11 = vcmask 261120  }
  0x18   : > { %v320_v0 = vld [vmem:[%s300_s12] sm:$0xf]  ;;  %s1506_s9 = smov 100   ;;  %s307_s12 = scalar_lea.vmem %s1971_s2, %s1250_s8  ;;  %317 = vst.msk [vmem:[#allocation4] sm:$0xff] %vm316_vm11, %v1504_v13  ;;  %vm488_vm12 = vcmask 64544   ;;  %vm572_vm13 = vcmask 97344  }
  0x19   : > { %v327_v1 = vsel %vm322_vm0, %v320_v0, 0  ;;  %v1622_v2 = vld [vmem:[%s293_s15] sm:$0xff]  ;;  %v404_v7 = vunpack.c.l.b16 %v320_v0  ;;  %s1514_s7 = smov 4   ;;  %s1515_s8 = smov 8   ;;  %vm656_vm14 = vcmask 130144   ;;  %vm740_vm15 = vcmask 162944  }
  0x1a   : > { %336 = vmatpush.bf16.xpose.msra.mxu0 %v327_v1  ;;  %v319_v3 = vpack.c.bf16 %v1622_v2, %v1622_v2  ;;  %v321_v20 = vld [vmem:[%s307_s12] sm:$0xf]  ;;  %s1518_s15 = smov 16  }
  0x1b   : > { %v405_v8 = vpack.c.b16 %v404_v7, %v404_v7  ;;  %v373_v21 = vsel %vm371_vm3, %v321_v20, 0  ;;  %v453_v22 = vunpack.c.l.b16 %v321_v20  ;;  %v1509_v7 = vmov 3  }
  0x1c   : > { %v399_v10 = vunpack.c.l.b16 %v319_v3  ;;  %v1638_v14 = vld [vmem:[#allocation2] sm:$0xff]  ;;  %382 = vmatpush.bf16.msra.mxu1 %v373_v21 }
  0x1d   : > { %493 = vrot.lane.b32.xlu2 %v405_v8, %s1498_s16  ;;  %v1663_v23 = vpack.c.b16 %v453_v22, %v453_v22 }
  0x1e   : > { %v400_v11 = vpack.c.b16 %v399_v10, %v399_v10 }
  0x21   : > { %1252 = vmatmul.msk.bf16.vlgmr.msra.gmra.mxu0 %vm322_vm0, %v319_v3  ;;  %v1507_v3 = vmov 1  }
  0x22   : > { %1353 = vset.pattern.permute.xlu2 %v1507_v3 }
  0x25   : > { %491 = vrot.lane.b32.xlu2 %v400_v11, %s1498_s16 }
  0x2d   : > { %575 = vrot.lane.b32.xlu2 %v400_v11, %s1500_s24 }
  0x35   : > { %659 = vrot.lane.b32.xlu2 %v400_v11, %s1502_s27 }
  0x3d   : > { %829 = vrot.lane.b32.xlu2 %v405_v8, %s1505_s29 }
  0x45   : > { %911 = vrot.lane.b32.xlu2 %v400_v11, %s1506_s9 }
  0x77   : > { %v494_v24 = vpop.permute.xlu2 %493 }
  0x78   : > { %v499_v25 = vsel %vm322_vm0, %v494_v24, 0 }
  0x79   : > { %508 = vmatpush.bf16.xpose.msrb.mxu1 %v499_v25 }
  0x7f   : > { %v492_v28 = vpop.permute.xlu2 %491 }
  0x87   : > { %v576_v32 = vpop.permute.xlu2 %575 }
  0x8f   : > { %v660_v38 = vpop.permute.xlu2 %659 }
  0x97   : > { %v830_v41 = vpop.permute.xlu2 %829 }
  0x98   : > { %v835_v42 = vsel %vm322_vm0, %v830_v41, 0 }
  0x9e   : > { %v338_v5 = vpop.f32.mrf.mxu0 }
  0x9f   : > { %v344_v6 = vsel %vm313_vm1, %v338_v5, -inf  ;;  %v912_v46 = vpop.permute.xlu2 %911 }
  0xa0   : > { %345 = vmax.xlane.f32.xlu0 %v344_v6  ;;  %v1508_v6 = vmov 2  }
  0xa1   : > { %1354 = vset.pattern.permute.xlu0 %v1508_v6 }
  0xa6   : > { %v340_v9 = vpop.f32.mrf.mxu0 }
  0xb4   : > { %406 = vrot.lane.b32.xlu0 %v405_v8, %s1499_s17 }
  0xbc   : > { %745 = vrot.lane.b32.xlu0 %v405_v8, %s1501_s25 }
  0xc4   : > { %827 = vrot.lane.b32.xlu0 %v400_v11, %s1505_s29 }
 0x113   : > { %v346_v15 = vpop.xlane.xlu0 %345 }
 0x114   : > { %v1641_v16 = vmax.f32 %v1638_v14, %v346_v15 }
 0x116   : > { %v348_v17 = vsub.f32 %v1638_v14, %v1641_v16  ;;  %397 = vst.msk [vmem:[#allocation2] sm:$0xff] %vm365_vm2, %v1641_v16  ;;  %353 = vperm.xlu1 %1352, %v1641_v16  }
 0x11e   : > { %401 = vrot.lane.b32.xlu1 %v400_v11, %s1499_s17 }
 0x11f   : > { %1355 = vset.pattern.permute.xlu1 %v1509_v7 }
 0x126   : > { %577 = vrot.lane.b32.xlu1 %v405_v8, %s1500_s24  ;;  %v407_v18 = vpop.permute.xlu0 %406 }
 0x127   : > { %v412_v19 = vsel %vm322_vm0, %v407_v18, 0 }
 0x128   : > { %421 = vmatpush.bf16.xpose.msra.mxu2 %v412_v19 }
 0x12e   : > { %661 = vrot.lane.b32.xlu1 %v405_v8, %s1502_s27  ;;  %v746_v34 = vpop.permute.xlu0 %745 }
 0x12f   : > { %v751_v36 = vsel %vm322_vm0, %v746_v34, 0 }
 0x136   : > { %743 = vrot.lane.b32.xlu1 %v400_v11, %s1501_s25  ;;  %v828_v47 = vpop.permute.xlu0 %827 }
 0x13e   : > { %913 = vrot.lane.b32.xlu1 %v405_v8, %s1506_s9  ;;  %v1716_v8 = vld [vmem:[#allocation2] sm:$0xff] }
 0x146   : > { %455 = vrot.lane.b32.xlu1 %v1663_v23, %s1499_s17  ;;  %s1520_s17 = smov 28  }
 0x188   : > { %v354_v26 = vpop.permute.xlu1 %353 }
 0x189   : > { %v356_v27 = vsub.f32 %v338_v5, %v354_v26 }
 0x18b   : > { %v357_v29 = vmul.f32 1.442695, %v356_v27 }
 0x18d   : > { %1379 = vpow2.f32 %v357_v29 }
 0x190   : > { %v402_v30 = vpop.permute.xlu1 %401 }
 0x191   : > { %1254 = vmatmul.msk.bf16.vlgmr.msra.gmra.mxu2 %vm322_vm0, %v402_v30  ;;  %v1510_v30 = vmov 4  }
 0x193   : > { %v1669_v31 = vpop.eup %1379 }
 0x194   : > { %v367_v33 = vpack.c.bf16 %v1669_v31, %v1669_v31 }
 0x196   : > { %1253 = vmatmul.msk.bf16.vlgmr.msra.gmra.mxu1 %vm313_vm1, %v367_v33 }
 0x198   : > { %v578_v35 = vpop.permute.xlu1 %577 }
 0x199   : > { %v583_v37 = vsel %vm322_vm0, %v578_v35, 0 }
 0x19a   : > { %592 = vmatpush.bf16.xpose.msrb.mxu0 %v583_v37 }
 0x1a0   : > { %v662_v39 = vpop.permute.xlu1 %661 }
 0x1a1   : > { %1258 = vmatmul.msk.bf16.vlgmr.msrb.gmra.mxu0 %vm322_vm0, %v576_v32  ;;  %v667_v40 = vsel %vm322_vm0, %v662_v39, 0  ;;  %v1511_v39 = vmov 5  }
 0x1a2   : > { %760 = vmatpush.bf16.xpose.msra.mxu0 %v751_v36  ;;  %676 = vmatpush.bf16.xpose.msra.mxu1 %v667_v40 }
 0x1a6   : > { %1256 = vmatmul.msk.bf16.vlgmr.msrb.gmra.mxu1 %vm322_vm0, %v492_v28 }
 0x1a8   : > { %v744_v43 = vpop.permute.xlu1 %743 }
 0x1aa   : > { %844 = vmatpush.bf16.xpose.msrb.mxu1 %v835_v42 }
 0x1b0   : > { %v914_v44 = vpop.permute.xlu1 %913 }
 0x1b1   : > { %1262 = vmatmul.msk.bf16.vlgmr.msra.gmra.mxu0 %vm322_vm0, %v744_v43  ;;  %v919_v45 = vsel %vm322_vm0, %v914_v44, 0 }
 0x1b2   : > { %928 = vmatpush.bf16.xpose.msrb.mxu0 %v919_v45 }
 0x1b6   : > { %1260 = vmatmul.msk.bf16.vlgmr.msra.gmra.mxu1 %vm322_vm0, %v660_v38 }
 0x1b8   : > { %v456_v15 = vpop.permute.xlu1 %455 }
 0x1b9   : > { %v461_v19 = vsel %vm371_vm3, %v456_v15, 0 }
 0x1ba   : > { %470 = vmatpush.bf16.msra.mxu3 %v461_v19 }
 0x1c1   : > { %1266 = vmatmul.msk.bf16.vlgmr.msrb.gmra.mxu0 %vm322_vm0, %v912_v46 }
 0x1c6   : > { %1264 = vmatmul.msk.bf16.vlgmr.msrb.gmra.mxu1 %vm322_vm0, %v828_v47 }
 0x213   : > { %v1685_v48 = vpop.f32.mrf.mxu1 }
 0x214   : > { %v1687_v49 = vpop.f32.mrf.mxu2 }
 0x215   : > { %v428_v50 = vsel %vm313_vm1, %v1687_v49, -inf }
 0x216   : > { %429 = vmax.xlane.f32.xlu0 %v428_v50 }
 0x21b   : > { %v386_v51 = vpop.f32.mrf.mxu1 }
 0x21c   : > { %v425_v52 = vpop.f32.mrf.mxu2 }
 0x21e   : > { %v1691_v53 = vpop.f32.mrf.mxu0 }
 0x21f   : > { %v599_v54 = vsel %vm313_vm1, %v1691_v53, -inf }
 0x220   : > { %600 = vmax.xlane.f32.xlu2 %v599_v54 }
 0x223   : > { %v1695_v55 = vpop.f32.mrf.mxu1 }
 0x224   : > { %v515_v56 = vsel %vm313_vm1, %v1695_v55, -inf }
 0x225   : > { %516 = vmax.xlane.f32.xlu1 %v515_v56 }
 0x226   : > { %v596_v57 = vpop.f32.mrf.mxu0 }
 0x22b   : > { %v512_v58 = vpop.f32.mrf.mxu1 }
 0x22e   : > { %v1699_v59 = vpop.f32.mrf.mxu0 }
 0x22f   : > { %v767_v60 = vsel %vm313_vm1, %v1699_v59, -inf }
 0x230   : > { %768 = vmax.xlane.f32.xlu0 %v767_v60 }
 0x233   : > { %v1703_v61 = vpop.f32.mrf.mxu1 }
 0x234   : > { %v683_v62 = vsel %vm313_vm1, %v1703_v61, -inf }
 0x236   : > { %v764_v63 = vpop.f32.mrf.mxu0 }
 0x238   : > { %684 = vmax.xlane.f32.xlu0 %v683_v62 }
 0x23b   : > { %v680_v0 = vpop.f32.mrf.mxu1 }
 0x23e   : > { %539 = vrot.lane.b32.xlu1 %v1663_v23, %s1498_s16  ;;  %v1709_v1 = vpop.f32.mrf.mxu0  ;;  %s1519_s16 = smov 24  }
 0x23f   : > { %v935_v4 = vsel %vm313_vm1, %v1709_v1, -inf }
 0x243   : > { %v1726_v18 = vpop.f32.mrf.mxu1 }
 0x244   : > { %v851_v37 = vsel %vm313_vm1, %v1726_v18, -inf }
 0x246   : > { %v932_v5 = vpop.f32.mrf.mxu0 }
 0x24b   : > { %v848_v25 = vpop.f32.mrf.mxu1 }
 0x268   : > { %936 = vmax.xlane.f32.xlu1 %v935_v4 }
 0x289   : > { %v430_v9 = vpop.xlane.xlu0 %429 }
 0x28a   : > { %v1719_v10 = vmax.f32 %v1716_v8, %v430_v9 }
 0x28c   : > { %v432_v11 = vsub.f32 %v1716_v8, %v1719_v10  ;;  %490 = vst.msk [vmem:[#allocation2] sm:$0xff] %vm449_vm4, %v1719_v10  ;;  %437 = vperm.xlu2 %1353, %v1719_v10  }
 0x293   : > { %v1729_v21 = vld [vmem:[#allocation2] sm:$0xff]  ;;  %v601_v26 = vpop.xlane.xlu2 %600 }
 0x298   : > { %v517_v20 = vpop.xlane.xlu1 %516 }
 0x299   : > { %v1732_v22 = vmax.f32 %v1729_v21, %v517_v20 }
 0x29b   : > { %v519_v24 = vsub.f32 %v1729_v21, %v1732_v22  ;;  %574 = vst.msk [vmem:[#allocation2] sm:$0xff] %vm536_vm5, %v1732_v22  ;;  %524 = vperm.xlu0 %1354, %v1732_v22  }
 0x2a2   : > { %v1739_v27 = vld [vmem:[#allocation2] sm:$0xff] }
 0x2a3   : > { %v1742_v28 = vmax.f32 %v1739_v27, %v601_v26  ;;  %v769_v29 = vpop.xlane.xlu0 %768  ;;  %623 = vrot.lane.b32.xlu0 %v1663_v23, %s1500_s24  ;;  %s284_s24 = sand.u32 1, %s1479_s19  }
 0x2a4   : > { %1356 = vset.pattern.permute.xlu0 %v1510_v30 }
 0x2a5   : > { %v603_v32 = vsub.f32 %v1739_v27, %v1742_v28  ;;  %658 = vst.msk [vmem:[#allocation2] sm:$0xff] %vm620_vm6, %v1742_v28  ;;  %608 = vperm.xlu1 %1355, %v1742_v28  }
 0x2ab   : > { %v685_v33 = vpop.xlane.xlu0 %684 }
 0x2ac   : > { %v1752_v34 = vld [vmem:[#allocation2] sm:$0xff] }
 0x2ad   : > { %v1755_v35 = vmax.f32 %v1752_v34, %v685_v33  ;;  %791 = vrot.lane.b32.xlu1 %v1663_v23, %s1501_s25  ;;  %s1248_s25 = sshll.u32 %s284_s24, 3 }
 0x2ae   : > { %1362 = vset.pattern.permute.xlu1 %v1508_v6 }
 0x2af   : > { %v687_v36 = vsub.f32 %v1752_v34, %v1755_v35  ;;  %742 = vst.msk [vmem:[#allocation2] sm:$0xff] %vm704_vm7, %v1755_v35  ;;  %692 = vperm.xlu0 %1356, %v1755_v35  }
 0x2b0   : > { %v540_v50 = vpop.permute.xlu1 %539 }
 0x2b1   : > { %v545_v51 = vsel %vm371_vm3, %v540_v50, 0  ;;  %v1513_v50 = vmov 7   ;;  %v688_v27 = vmul.f32 1.442695, %v687_v36  ;;  %v359_v36 = vld [vmem:[#allocation3] sm:$0xff] }
 0x2b2   : > { %554 = vmatpush.bf16.msrb.mxu3 %v545_v51 }
 0x2b5   : > { %852 = vmax.xlane.f32.xlu2 %v851_v37 }
 0x2b6   : > { %v1767_v38 = vld [vmem:[#allocation2] sm:$0xff] }
 0x2b7   : > { %1357 = vset.pattern.permute.xlu0 %v1511_v39  ;;  %v1771_v40 = vmax.f32 %v1767_v38, %v769_v29 }
 0x2b9   : > { %776 = vperm.xlu0 %1357, %v1771_v40   ;;  %v771_v41 = vsub.f32 %v1767_v38, %v1771_v40  ;;  %826 = vst.msk [vmem:[#allocation2] sm:$0xff] %vm788_vm8, %v1771_v40 }
 0x2c0   : > { %v1805_v26 = vld [vmem:[#allocation2] sm:$0xff] }
 0x2c1   : > { %875 = vrot.lane.b32.xlu0 %v1663_v23, %s1505_s29 }
 0x2c2   : > { %1360 = vset.pattern.permute.xlu0 %v1503_v12 }
 0x2c9   : > { %959 = vrot.lane.b32.xlu0 %v1663_v23, %s1506_s9 }
 0x2cd   : > { %707 = vrot.lane.b32.xlu2 %v1663_v23, %s1502_s27  ;;  %v349_v23 = vmul.f32 1.442695, %v348_v17  ;;  %s1269_s27 = sshll.u32 %s1487_s21, 3 }
 0x2ce   : > { %s1134_s12 = scalar_lea.hbm %s1974_s5, %s1269_s27 }
 0x2db   : > { %v937_v56 = vpop.xlane.xlu1 %936 }
 0x2e6   : > { %v438_v42 = vpop.permute.xlu2 %437 }
 0x2e7   : > { %v440_v43 = vsub.f32 %v1687_v49, %v438_v42  ;;  %v1512_v49 = vmov 6  }
 0x2e8   : > { %1358 = vset.pattern.permute.xlu2 %v1512_v49 }
 0x2e9   : > { %v441_v44 = vmul.f32 1.442695, %v440_v43 }
 0x2eb   : > { %1381 = vpow2.f32 %v441_v44 }
 0x2ec   : > { %1383 = vpow2.f32 %v349_v23 }
 0x2f1   : > { %v1382_v45 = vpop.eup %1381 }
 0x2f2   : > { %v445_v46 = vsel %vm313_vm1, %v1382_v45, 0.0  ;;  %v451_v47 = vpack.c.bf16 %v1382_v45, %v1382_v45  ;;  %v1792_v52 = vpop.eup %1383 }
 0x2f3   : > { %446 = vadd.xlane.f32.xlu0 %v445_v46 }
 0x2f4   : > { %1255 = vmatmul.msk.bf16.vlgmr.msra.gmra.mxu3 %vm313_vm1, %v451_v47 }
 0x307   : > { %391 = vperm.xlu0 %1360, %v1792_v52  }
 0x30d   : > { %v525_v54 = vpop.permute.xlu0 %524 }
 0x30e   : > { %v527_v57 = vsub.f32 %v1695_v55, %v525_v54 }
 0x30f   : > { %1363 = vset.pattern.permute.xlu0 %v1509_v7 }
 0x310   : > { %v528_v58 = vmul.f32 1.442695, %v527_v57 }
 0x312   : > { %1385 = vpow2.f32 %v528_v58 }
 0x315   : > { %v624_v60 = vpop.permute.xlu0 %623 }
 0x316   : > { %v629_v14 = vsel %vm371_vm3, %v624_v60, 0 }
 0x317   : > { %v609_v16 = vpop.permute.xlu1 %608  ;;  %638 = vmatpush.bf16.msrb.mxu2 %v629_v14  ;;  %v361_v14 = vsel %vm313_vm1, %v1669_v31, 0.0 }
 0x318   : > { %v1386_v17 = vpop.eup %1385  ;;  %v611_v62 = vsub.f32 %v1691_v53, %v609_v16 }
 0x319   : > { %v532_v63 = vsel %vm313_vm1, %v1386_v17, 0.0  ;;  %v538_v0 = vpack.c.bf16 %v1386_v17, %v1386_v17 }
 0x31a   : > { %v612_v4 = vmul.f32 1.442695, %v611_v62  ;;  %533 = vadd.xlane.f32.xlu1 %v532_v63  ;;  %v433_v62 = vmul.f32 1.442695, %v432_v11 }
 0x31b   : > { %1257 = vmatmul.msk.bf16.vlgmr.msrb.gmra.mxu3 %vm313_vm1, %v538_v0  ;;  %v388_v0 = vld [vmem:[#allocation4] sm:$0xff] }
 0x31c   : > { %1387 = vpow2.f32 %v612_v4 }
 0x31f   : > { %v792_v55 = vpop.permute.xlu1 %791 }
 0x320   : > { %v797_v5 = vsel %vm371_vm3, %v792_v55, 0 }
 0x321   : > { %v693_v9 = vpop.permute.xlu0 %692  ;;  %806 = vmatpush.bf16.msra.mxu2 %v797_v5 }
 0x322   : > { %v1388_v15 = vpop.eup %1387  ;;  %v695_v19 = vsub.f32 %v1703_v61, %v693_v9 }
 0x323   : > { %v622_v20 = vpack.c.bf16 %v1388_v15, %v1388_v15  ;;  %v616_v16 = vsel %vm313_vm1, %v1388_v15, 0.0 }
 0x324   : > { %v696_v53 = vmul.f32 1.442695, %v695_v19 }
 0x325   : > { %1259 = vmatmul.msk.bf16.vlgmr.msrb.gmra.mxu2 %vm313_vm1, %v622_v20 }
 0x326   : > { %1389 = vpow2.f32 %v696_v53 }
 0x328   : > { %v853_v25 = vpop.xlane.xlu2 %852 }
 0x329   : > { %v1808_v29 = vmax.f32 %v1805_v26, %v853_v25 }
 0x32b   : > { %v855_v33 = vsub.f32 %v1805_v26, %v1808_v29  ;;  %910 = vst.msk [vmem:[#allocation2] sm:$0xff] %vm872_vm9, %v1808_v29  ;;  %860 = vperm.xlu2 %1358, %v1808_v29   ;;  %v777_v61 = vpop.permute.xlu0 %776  ;;  %v360_v26 = vmul.f32 %v1792_v52, %v359_v36 }
 0x32c   : > { %v779_v37 = vsub.f32 %v1699_v59, %v777_v61  ;;  %v1816_v43 = vpop.eup %1389  ;;  %v604_v61 = vmul.f32 1.442695, %v603_v32  ;;  %v520_v32 = vmul.f32 1.442695, %v519_v24 }
 0x32d   : > { %v706_v47 = vpack.c.bf16 %v1816_v43, %v1816_v43  ;;  %v856_v34 = vmul.f32 1.442695, %v855_v33 }
 0x32e   : > { %v780_v42 = vmul.f32 1.442695, %v779_v37 }
 0x330   : > { %1391 = vpow2.f32 %v780_v42  ;;  %v708_v44 = vpop.permute.xlu2 %707 }
 0x331   : > { %v713_v45 = vsel %vm371_vm3, %v708_v44, 0  ;;  %1393 = vpow2.f32 %v433_v62 }
 0x332   : > { %722 = vmatpush.bf16.msra.mxu3 %v713_v45  ;;  %v1819_v46 = vld [vmem:[#allocation2] sm:$0xff] }
 0x333   : > { %1359 = vset.pattern.permute.xlu2 %v1513_v50  ;;  %v1825_v51 = vmax.f32 %v1819_v46, %v937_v56  ;;  %v876_v59 = vpop.permute.xlu0 %875 }
 0x334   : > { %v881_v23 = vsel %vm371_vm3, %v876_v59, 0 }
 0x335   : > { %1261 = vmatmul.msk.bf16.vlgmr.msra.gmra.mxu3 %vm313_vm1, %v706_v47  ;;  %944 = vperm.xlu2 %1359, %v1825_v51   ;;  %v939_v54 = vsub.f32 %v1819_v46, %v1825_v51  ;;  %994 = vst.msk [vmem:[#allocation2] sm:$0xff] %vm956_vm10, %v1825_v51 }
 0x336   : > { %v1392_v57 = vpop.eup %1391  ;;  %890 = vmatpush.bf16.msrb.mxu3 %v881_v23 }
 0x337   : > { %v790_v58 = vpack.c.bf16 %v1392_v57, %v1392_v57  ;;  %v1848_v31 = vpop.eup %1393  ;;  %v784_v42 = vsel %vm313_vm1, %v1392_v57, 0.0 }
 0x339   : > { %1263 = vmatmul.msk.bf16.vlgmr.msra.gmra.mxu2 %vm313_vm1, %v790_v58 }
 0x33b   : > { %v960_v56 = vpop.permute.xlu0 %959 }
 0x33c   : > { %v965_v60 = vsel %vm371_vm3, %v960_v56, 0  ;;  %vm992_vm3 = vcmask 261344  }
 0x33d   : > { %1361 = vset.pattern.permute.xlu2 %v1507_v3  ;;  %974 = vmatpush.bf16.msrb.mxu2 %v965_v60 }
 0x35e   : > { %362 = vadd.xlane.f32.xlu2 %v361_v14 }
 0x366   : > { %617 = vadd.xlane.f32.xlu2 %v616_v16  ;;  %v1842_v17 = vpop.xlane.xlu0 %446 }
 0x377   : > { %v472_v63 = vpop.f32.mrf.mxu3 }
 0x378   : > { %484 = vrot.lane.b32.xlu1 %v472_v63, %s1514_s7 }
 0x379   : > { %v392_v4 = vpop.permute.xlu0 %391 }
 0x37a   : > { %v394_v13 = vmul.f32 %v392_v4, %v388_v0 }
 0x37c   : > { %v395_v55 = vadd.f32 %v394_v13, %v1685_v48 }
 0x37e   : > { %396 = vst.msk [vmem:[#allocation4] sm:$0xff] %vm322_vm0, %v395_v55  ;;  %479 = vperm.xlu2 %1361, %v1848_v31  }
 0x37f   : > { %v474_v5 = vpop.f32.mrf.mxu3 }
 0x385   : > { %v861_v9 = vpop.permute.xlu2 %860  ;;  %v476_v52 = vld [vmem:[#allocation4] sm:$0xff] }
 0x386   : > { %v863_v8 = vsub.f32 %v1726_v18, %v861_v9  ;;  %1370 = vset.pattern.permute.xlu2 %v1508_v6  ;;  %v940_v9 = vmul.f32 1.442695, %v939_v54 }
 0x388   : > { %v864_v10 = vmul.f32 1.442695, %v863_v8 }
 0x38a   : > { %1395 = vpow2.f32 %v864_v10 }
 0x38d   : > { %v534_v60 = vpop.xlane.xlu1 %533 }
 0x38f   : > { %v945_v11 = vpop.permute.xlu2 %944 }
 0x390   : > { %v1396_v15 = vpop.eup %1395  ;;  %v947_v19 = vsub.f32 %v1709_v1, %v945_v11  ;;  %v700_v1 = vsel %vm313_vm1, %v1816_v43, 0.0 }
 0x391   : > { %v874_v20 = vpack.c.bf16 %v1396_v15, %v1396_v15  ;;  %v868_v14 = vsel %vm313_vm1, %v1396_v15, 0.0 }
 0x392   : > { %v948_v48 = vmul.f32 1.442695, %v947_v19 }
 0x393   : > { %1265 = vmatmul.msk.bf16.vlgmr.msrb.gmra.mxu3 %vm313_vm1, %v874_v20 }
 0x394   : > { %1397 = vpow2.f32 %v948_v48 }
 0x395   : > { %1399 = vpow2.f32 %v604_v61 }
 0x396   : > { %1401 = vpow2.f32 %v688_v27 }
 0x397   : > { %1403 = vpow2.f32 %v520_v32 }
 0x398   : > { %1405 = vpow2.f32 %v856_v34 }
 0x39a   : > { %v1398_v53 = vpop.eup %1397 }
 0x39b   : > { %v958_v25 = vpack.c.bf16 %v1398_v53, %v1398_v53  ;;  %v1400_v18 = vpop.eup %1399  ;;  %v952_v28 = vsel %vm313_vm1, %v1398_v53, 0.0 }
 0x39c   : > { %v1402_v45 = vpop.eup %1401 }
 0x39d   : > { %1267 = vmatmul.msk.bf16.vlgmr.msrb.gmra.mxu2 %vm313_vm1, %v958_v25  ;;  %v1404_v59 = vpop.eup %1403  ;;  %vm824_vm1 = vcmask 195744  }
 0x39e   : > { %v556_v6 = vpop.f32.mrf.mxu3  ;;  %v1876_v24 = vpop.eup %1405 }
 0x39f   : > { %568 = vrot.lane.b32.xlu0 %v556_v6, %s1515_s8 }
 0x3a2   : > { %701 = vadd.xlane.f32.xlu1 %v700_v1 }
 0x3a6   : > { %v558_v37 = vpop.f32.mrf.mxu3 }
 0x3a7   : > { %647 = vperm.xlu0 %1363, %v1400_v18   ;;  %785 = vadd.xlane.f32.xlu2 %v784_v42 }
 0x3a8   : > { %v640_v44 = vpop.f32.mrf.mxu2 }
 0x3af   : > { %652 = vrot.lane.b32.xlu0 %v640_v44, %s1516_s13  ;;  %953 = vadd.xlane.f32.xlu2 %v952_v28  ;;  %s286_s13 = scalar_lea.vmem [#allocation5], %s1248_s25  ;;  %s1437_s25 = scalar_lea.hbm %s1974_s5, 16 }
 0x3b0   : > { %v642_v43 = vpop.f32.mrf.mxu2  ;;  %1364 = vset.pattern.permute.xlu0 %v1510_v30  ;;  %s1136_s21 = sshll.u32 %s286_s13, 4  ;;  %s1137_s21 = int_to_ptr.vmem [resolvable:$true] %s1136_s21 }
 0x3b7   : > { %731 = vperm.xlu0 %1364, %v1402_v45  }
 0x3b8   : > { %v724_v47 = vpop.f32.mrf.mxu3 }
 0x3bb   : > { %563 = vperm.xlu1 %1362, %v1404_v59  }
 0x3bc   : > { %v808_v35 = vpop.f32.mrf.mxu2 }
 0x3bf   : > { %820 = vrot.lane.b32.xlu0 %v808_v35, %s1517_s14  ;;  %s1138_s14 = sshll.u32 %s1134_s12, 4  ;;  %s1139_s14 = int_to_ptr.hbm [resolvable:$true] %s1138_s14 }
 0x3c0   : > { %v726_v21 = vpop.f32.mrf.mxu3  ;;  %1366 = vset.pattern.permute.xlu0 %v1512_v49 }
 0x3c3   : > { %1365 = vset.pattern.permute.xlu1 %v1511_v39 }
 0x3c4   : > { %v810_v22 = vpop.f32.mrf.mxu2 }
 0x3c7   : > { %736 = vrot.lane.b32.xlu2 %v724_v47, %s1518_s15  ;;  %899 = vperm.xlu0 %1366, %v1876_v24   ;;  %s1123_s15 = scalar_lea.sflag [#allocation6], %s284_s24 }
 0x3cf   : > { %1368 = vset.pattern.permute.xlu0 %v1503_v12 }
 0x3d1   : > { %v363_v29 = vpop.xlane.xlu2 %362 }
 0x3d2   : > { %v364_v33 = vadd.f32 %v363_v29, %v360_v26 }
 0x3d4   : > { %366 = vst.msk [vmem:[#allocation3] sm:$0xff] %vm365_vm2, %v364_v33  ;;  %vm908_vm2 = vcmask 228544  }
 0x3d9   : > { %v618_v58 = vpop.xlane.xlu2 %617 }
 0x3db   : > { %v443_v23 = vld [vmem:[#allocation3] sm:$0xff] }
 0x3dc   : > { %v444_v57 = vmul.f32 %v1848_v31, %v443_v23 }
 0x3de   : > { %v448_v56 = vadd.f32 %v1842_v17, %v444_v57  ;;  %v772_v17 = vmul.f32 1.442695, %v771_v41 }
 0x3e0   : > { %450 = vst.msk [vmem:[#allocation3] sm:$0xff] %vm449_vm4, %v448_v56  ;;  %1407 = vpow2.f32 %v772_v17 }
 0x3e1   : > { %v480_v16 = vpop.permute.xlu2 %479  ;;  %1409 = vpow2.f32 %v940_v9 }
 0x3e2   : > { %v482_v63 = vmul.f32 %v480_v16, %v476_v52 }
 0x3e5   : > { %869 = vadd.xlane.f32.xlu1 %v868_v14 }
 0x3e6   : > { %v1408_v8 = vpop.eup %1407 }
 0x3e7   : > { %v530_v12 = vld [vmem:[#allocation3] sm:$0xff]  ;;  %v1410_v10 = vpop.eup %1409 }
 0x3e8   : > { %v531_v62 = vmul.f32 %v1404_v59, %v530_v12 }
 0x3ea   : > { %v535_v0 = vadd.f32 %v534_v60, %v531_v62  ;;  %v485_v4 = vpop.permute.xlu1 %484 }
 0x3eb   : > { %v487_v13 = vadd.f32 %v485_v4, %v482_v63 }
 0x3ec   : > { %537 = vst.msk [vmem:[#allocation3] sm:$0xff] %vm536_vm5, %v535_v0 }
 0x3ed   : > { %489 = vst.msk [vmem:[#allocation4] sm:$0xff] %vm488_vm12, %v487_v13 }
 0x3f3   : > { %v614_v55 = vld [vmem:[#allocation3] sm:$0xff] }
 0x3f4   : > { %v615_v31 = vmul.f32 %v1400_v18, %v614_v55  ;;  %v560_v25 = vld [vmem:[#allocation4] sm:$0xff] }
 0x3f6   : > { %v619_v5 = vadd.f32 %v618_v58, %v615_v31 }
 0x3f8   : > { %621 = vst.msk [vmem:[#allocation3] sm:$0xff] %vm620_vm6, %v619_v5 }
 0x3fe   : > { %815 = vperm.xlu1 %1365, %v1408_v8  }
 0x3ff   : > { %v698_v38 = vld [vmem:[#allocation3] sm:$0xff] }
 0x400   : > { %v699_v40 = vmul.f32 %v1402_v45, %v698_v38 }
 0x406   : > { %1367 = vset.pattern.permute.xlu1 %v1513_v50 }
 0x407   : > { %983 = vperm.xlu1 %1367, %v1410_v10  }
 0x40f   : > { %1369 = vset.pattern.permute.xlu1 %v1507_v3 }
 0x411   : > { %v569_v3 = vpop.permute.xlu0 %568 }
 0x415   : > { %v702_v41 = vpop.xlane.xlu1 %701 }
 0x416   : > { %v703_v11 = vadd.f32 %v702_v41, %v699_v40  ;;  %v892_v15 = vpop.f32.mrf.mxu3 }
 0x417   : > { %904 = vrot.lane.b32.xlu2 %v892_v15, %s1519_s16  ;;  %s1431_s16 = sshra.s32 %s1139_s14, 4  ;;  %s1432_s16 = int_to_ptr.hbm [resolvable:$true] %s1431_s16 }
 0x418   : > { %705 = vst.msk [vmem:[#allocation3] sm:$0xff] %vm704_vm7, %v703_v11  ;;  %p1438_p1 = scmp.lt.s32.totalorder %s1432_s16, %s1974_s5 }
 0x419   : > { %v648_v18 = vpop.permute.xlu0 %647 }
 0x41a   : > { %v786_v20 = vpop.xlane.xlu2 %785 }
 0x41e   : > { %v894_v46 = vpop.f32.mrf.mxu3 }
 0x41f   : > { %v782_v51 = vld [vmem:[#allocation3] sm:$0xff] }
 0x420   : > { %v783_v54 = vmul.f32 %v1408_v8, %v782_v51  ;;  %v976_v19 = vpop.f32.mrf.mxu2 }
 0x421   : > { %988 = vrot.lane.b32.xlu2 %v976_v19, %s1520_s17  ;;  %v653_v44 = vpop.permute.xlu0 %652  ;;  %s1433_s17 = scalar_lea.hbm %s1432_s16, 8 }
 0x422   : > { %v787_v48 = vadd.f32 %v786_v20, %v783_v54  ;;  %v954_v28 = vpop.xlane.xlu2 %953  ;;  %p1434_p12 = scmp.ne.s32.totalorder %s1432_s16, %s1433_s17  ;;  %p1439_p2 = scmp.lt.s32.totalorder %s1437_s25, %s1433_s17 }
 0x424   : > { %789 = vst.msk [vmem:[#allocation3] sm:$0xff] %vm788_vm8, %v787_v48  ;;  %p1435_p13 = pnand %p1434_p12, %p1592_p4  ;;  %p1440_p3 = por %p1439_p2, %p1438_p1 }
 0x426   : > { %p1436_p0 = pneg %p1435_p13 }
 0x428   : > { %v978_v53 = vpop.f32.mrf.mxu2  ;;  %p1441_p5 = pnand %p1440_p3, %p1436_p0 }
 0x429   : > { %v732_v32 = vpop.permute.xlu0 %731 }
 0x42a   : > { %v737_v47 = vpop.permute.xlu2 %736 }
 0x42b   : > { %v866_v34 = vld [vmem:[#allocation3] sm:$0xff] }
 0x42c   : > { %v867_v35 = vmul.f32 %v1876_v24, %v866_v34 }
 0x42d   : > { %v564_v61 = vpop.permute.xlu1 %563 }
 0x42e   : > { %v566_v6 = vmul.f32 %v564_v61, %v560_v25 }
 0x430   : > { %v571_v1 = vadd.f32 %v569_v3, %v566_v6 }
 0x431   : > { %v821_v56 = vpop.permute.xlu0 %820 }
 0x432   : > { %573 = vst.msk [vmem:[#allocation4] sm:$0xff] %vm572_vm13, %v571_v1  ;;  %v1521_v1 = vmov 32.0  }
 0x439   : > { %v644_v37 = vld [vmem:[#allocation4] sm:$0xff]  ;;  %v900_v24 = vpop.permute.xlu0 %899 }
 0x43a   : > { %v650_v42 = vmul.f32 %v648_v18, %v644_v37 }
 0x43c   : > { %v655_v27 = vadd.f32 %v653_v44, %v650_v42 }
 0x43e   : > { %657 = vst.msk [vmem:[#allocation4] sm:$0xff] %vm656_vm14, %v655_v27 }
 0x445   : > { %v728_v43 = vld [vmem:[#allocation4] sm:$0xff] }
 0x446   : > { %v734_v45 = vmul.f32 %v732_v32, %v728_v43 }
 0x448   : > { %v739_v59 = vadd.f32 %v737_v47, %v734_v45 }
 0x44a   : > { %741 = vst.msk [vmem:[#allocation4] sm:$0xff] %vm740_vm15, %v739_v59 }
 0x451   : > { %v812_v23 = vld [vmem:[#allocation4] sm:$0xff] }
 0x458   : > { %v870_v21 = vpop.xlane.xlu1 %869 }
 0x459   : > { %v871_v22 = vadd.f32 %v870_v21, %v867_v35 }
 0x45b   : > { %873 = vst.msk [vmem:[#allocation3] sm:$0xff] %vm872_vm9, %v871_v22 }
 0x462   : > { %v950_v36 = vld [vmem:[#allocation3] sm:$0xff] }
 0x463   : > { %v951_v26 = vmul.f32 %v1410_v10, %v950_v36 }
 0x465   : > { %v955_v29 = vadd.f32 %v954_v28, %v951_v26 }
 0x467   : > { %957 = vst.msk [vmem:[#allocation3] sm:$0xff] %vm956_vm10, %v955_v29 }
 0x46e   : > { %v1018_v33 = vld [vmem:[#allocation3] sm:$0xff] }
 0x46f   : > { %1411 = vrcp.f32 %v1018_v33 }
 0x470   : > { %v816_v57 = vpop.permute.xlu1 %815  ;;  %1413 = vrcp.f32 %v1521_v1 }
 0x471   : > { %v818_v58 = vmul.f32 %v816_v57, %v812_v23  ;;  %v905_v62 = vpop.permute.xlu2 %904  ;;  %v1377_v23 = vld [vmem:[%s1972_s3] ss:$0 sm:$0xff] }
 0x473   : > { %v823_v60 = vadd.f32 %v821_v56, %v818_v58  ;;  %v1378_v56 = vld [vmem:[%s1973_s4] ss:$0 sm:$0xff] }
 0x475   : > { %v1412_v14 = vpop.eup %1411  ;;  %825 = vst.msk [vmem:[#allocation4] sm:$0xff] %vm824_vm1, %v823_v60 }
 0x476   : > { %1023 = vperm.xlu2 %1370, %v1412_v14   ;;  %1013 = vperm.xlu1 %1369, %v1412_v14   ;;  %v1414_v18 = vpop.eup %1413 }
 0x477   : > { %1003 = vperm.xlu0 %1368, %v1412_v14   ;;  %v1086_v37 = vmul.f32 32.0, %v1414_v18 }
 0x479   : > { %v984_v0 = vpop.permute.xlu1 %983  ;;  %v1087_v42 = vsub.f32 1.0, %v1086_v37 }
 0x47b   : > { %v1088_v44 = vmul.f32 %v1414_v18, %v1087_v42 }
 0x47c   : > { %v896_v16 = vld [vmem:[#allocation4] sm:$0xff] }
 0x47d   : > { %v902_v12 = vmul.f32 %v900_v24, %v896_v16  ;;  %v1089_v27 = vadd.f32 %v1414_v18, %v1088_v44 }
 0x47e   : > { %1372 = vset.pattern.permute.xlu2 %v1510_v30  ;;  %1371 = vset.pattern.permute.xlu1 %v1509_v7  ;;  %v989_v7 = vpop.permute.xlu2 %988 }
 0x47f   : > { %v907_v52 = vadd.f32 %v905_v62, %v902_v12  ;;  %1373 = vset.pattern.permute.xlu0 %v1511_v39  ;;  %1043 = vperm.xlu2 %1372, %v1412_v14  }
 0x480   : > { %1033 = vperm.xlu1 %1371, %v1412_v14   ;;  %1053 = vperm.xlu0 %1373, %v1412_v14  }
 0x481   : > { %909 = vst.msk [vmem:[#allocation4] sm:$0xff] %vm908_vm2, %v907_v52 }
 0x487   : > { %1375 = vset.pattern.permute.xlu2 %v1513_v50 }
 0x488   : > { %v980_v63 = vld [vmem:[#allocation4] sm:$0xff]  ;;  %1374 = vset.pattern.permute.xlu1 %v1512_v49  ;;  %1073 = vperm.xlu2 %1375, %v1412_v14  }
 0x489   : > { %v986_v4 = vmul.f32 %v984_v0, %v980_v63  ;;  %1063 = vperm.xlu1 %1374, %v1412_v14   ;;  %1376 = vset.pattern.permute.xlu0 %v1513_v50 }
 0x48b   : > { %v991_v30 = vadd.f32 %v989_v7, %v986_v4 }
 0x48d   : > { %993 = vst.msk [vmem:[#allocation4] sm:$0xff] %vm992_vm3, %v991_v30 }
 0x494   : > { %v1000_v13 = vld [vmem:[#allocation4] sm:$0xff] }
 0x4d0   : > { %v1024_v49 = vpop.permute.xlu2 %1023 }
 0x4d9   : > { %v1044_v40 = vpop.permute.xlu2 %1043 }
 0x4e2   : > { %v1074_v48 = vpop.permute.xlu2 %1073 }
 0x4e8   : > { %v1014_v31 = vpop.permute.xlu1 %1013 }
 0x4e9   : > { %v1004_v39 = vpop.permute.xlu0 %1003 }
 0x4ea   : > { %v1006_v17 = vmul.f32 %v1004_v39, %v1000_v13 }
 0x4ec   : > { %1007 = vst.msk [vmem:[#allocation4] sm:$0xff] %vm322_vm0, %v1006_v17  ;;  %vm1090_vm0 = vweird.f32 %v1414_v18 }
 0x4ed   : > { %v1091_v28 = vsel %vm1090_vm0, %v1414_v18, %v1089_v27 }
 0x4f2   : > { %v1034_v10 = vpop.permute.xlu1 %1033  ;;  %v1054_v15 = vpop.permute.xlu0 %1053 }
 0x4f3   : > { %v1010_v55 = vld [vmem:[#allocation4] sm:$0xff] }
 0x4f4   : > { %v1016_v5 = vmul.f32 %v1014_v31, %v1010_v55 }
 0x4f6   : > { %1017 = vst.msk [vmem:[#allocation4] sm:$0xff] %vm488_vm12, %v1016_v5 }
 0x4fb   : > { %v1064_v19 = vpop.permute.xlu1 %1063 }
 0x4fd   : > { %v1020_v9 = vld [vmem:[#allocation4] sm:$0xff] }
 0x4fe   : > { %v1026_v8 = vmul.f32 %v1024_v49, %v1020_v9 }
 0x500   : > { %1027 = vst.msk [vmem:[#allocation4] sm:$0xff] %vm572_vm13, %v1026_v8 }
 0x507   : > { %v1030_v50 = vld [vmem:[#allocation4] sm:$0xff] }
 0x508   : > { %v1036_v38 = vmul.f32 %v1034_v10, %v1030_v50 }
 0x50a   : > { %1037 = vst.msk [vmem:[#allocation4] sm:$0xff] %vm656_vm14, %v1036_v38 }
 0x511   : > { %v1040_v41 = vld [vmem:[#allocation4] sm:$0xff] }
 0x512   : > { %v1046_v11 = vmul.f32 %v1044_v40, %v1040_v41 }
 0x514   : > { %1047 = vst.msk [vmem:[#allocation4] sm:$0xff] %vm740_vm15, %v1046_v11 }
 0x51b   : > { %v1050_v46 = vld [vmem:[#allocation4] sm:$0xff] }
 0x51c   : > { %v1056_v51 = vmul.f32 %v1054_v15, %v1050_v46 }
 0x51e   : > { %1057 = vst.msk [vmem:[#allocation4] sm:$0xff] %vm824_vm1, %v1056_v51 }
 0x525   : > { %v1060_v54 = vld [vmem:[#allocation4] sm:$0xff] }
 0x526   : > { %v1066_v20 = vmul.f32 %v1064_v19, %v1060_v54 }
 0x528   : > { %1067 = vst.msk [vmem:[#allocation4] sm:$0xff] %vm908_vm2, %v1066_v20 }
 0x52f   : > { %v1070_v3 = vld [vmem:[#allocation4] sm:$0xff] }
 0x530   : > { %v1076_v53 = vmul.f32 %v1074_v48, %v1070_v3 }
 0x532   : > { %1077 = vst.msk [vmem:[#allocation4] sm:$0xff] %vm992_vm3, %v1076_v53 }
 0x539   : > { %v1078_v25 = vld [vmem:[#allocation4] sm:$0xff] }
 0x53a   : > { %v1080_v61 = vadd.f32 %v1078_v25, %v1622_v2 }
 0x53c   : > { %v1082_v6 = vsel %vm316_vm11, %v1080_v61, 0.0 }
 0x53d   : > { %1083 = vadd.xlane.f32.xlu1 %v1082_v6 }
 0x5b0   : > { %v1084_v32 = vpop.xlane.xlu1 %1083 }
 0x5b1   : > { %v1092_v43 = vmul.f32 %v1091_v28, %v1084_v32 }
 0x5b3   : > { %v1093_v45 = vsub.f32 %v1080_v61, %v1092_v43 }
 0x5b5   : > { %v1094_v47 = vmul.f32 %v1093_v45, %v1093_v45 }
 0x5b7   : > { %v1095_v2 = vsel %vm316_vm11, %v1094_v47, 0.0 }
 0x5b8   : > { %1096 = vadd.xlane.f32.xlu2 %v1095_v2 }
 0x62b   : > { %v1097_v59 = vpop.xlane.xlu2 %1096 }
 0x62c   : > { %v1098_v34 = vmul.f32 %v1097_v59, %v1091_v28 }
 0x62e   : > { %v1099_v35 = vadd.f32 1e-05, %v1098_v34 }
 0x630   : > { %1415 = vrsqrt.f32 %v1099_v35  ;;  %vm1106_vm5 = vweird.f32 %v1099_v35 }
 0x636   : > { %v1416_v21 = vpop.eup %1415 }
 0x637   : > { %v1101_v22 = vmul.f32 %v1416_v21, %v1099_v35  ;;  %vm1107_vm4 = vweird.f32 %v1416_v21 }
 0x638   : > { %vm1108_vm6 = vmor %vm1106_vm5, %vm1107_vm4 }
 0x639   : > { %v1102_v36 = vmul.f32 %v1416_v21, %v1101_v22 }
 0x63b   : > { %v1103_v26 = vmul.f32 0.5, %v1102_v36 }
 0x63d   : > { %v1104_v29 = vsub.f32 1.5, %v1103_v26 }
 0x63f   : > { %v1105_v33 = vmul.f32 %v1416_v21, %v1104_v29 }
 0x641   : > { %v1109_v57 = vsel %vm1108_vm6, %v1416_v21, %v1105_v33 }
 0x642   : > { %v1110_v58 = vmul.f32 %v1109_v57, %v1093_v45 }
 0x644   : > { %v1115_v60 = vmul.f32 %v1377_v23, %v1110_v58 }
 0x646   : > { %v1120_v14 = vadd.f32 %v1378_v56, %v1115_v60 }
 0x648   : > { %1121 = vst.msk [vmem:[%s286_s13] sm:$0xff] %vm316_vm11, %v1120_v14 }
 0x649   : > { %1444 = shalt.err (!%p1441_p5)
}
 0x64a   : > { %1272 = dma.vmem_to_hbm [thread:$0]  (%p1592_p4), %s1137_s21, 128, %s1139_s14, %s1123_s15  }
 0x64b PF: > { %p1278_p6 = scmp.ge.s32.totalorder %s1495_s23, 2  ;;  %s1150_s24 = sand.u32 1, %s1475_s18  }
 0x64c   : > { %s1151_s11 = scalar_lea.sflag [#allocation6], %s1150_s24 }
 0x64d   : > { %p1275_p7 = pnand %p1278_p6, %p1599_p8 }
 0x64f   : > { %p1276_p9 = pneg %p1275_p7 }
 0x651   : > { %1470 = dma.done.wait (%p1276_p9), %s1151_s11, 128  }
 0x652   : > { %1472 = vsyncadd (%p1276_p9), %s1151_s11, 4294967168  ;;  %s18_s23 = sadd.s32 1, %s1495_s23   ;;  %s1977_s18 = smov %s1479_s19 }
 0x653   : > { %p15_p10 = scmp.ge.s32.totalorder %s18_s23, 4   ;;  %s1978_s19 = smov %s1483_s20 }
 0x654   : > { %s1979_s20 = smov %s1605_s6  ;;  %s1980_s21 = smov %s1491_s22 }
 0x655   : > { %s1981_s22 = smov %s1983_s26  ;;  %17 = sbr.rel (!%p15_p10) target bundleno = 4 (0x4), region = 89 }
 0x65a   :  { %1157 = vsyncpa [#allocation6], 1 }
 0x65b   :  { %1159 = vsyncpa [#allocation6 + $0x1], 1 }

</bundles_post_ra>
